<compile_context>
chip_gen: v7x
topology: tpu7x:2x2x1
jax: 0.10.0
libtpu: 0.0.40
codegen_flags: <defaults>
</compile_context>

<pallas_src>
import numpy as np
import jax
import jax.numpy as jnp
from jax.experimental import pallas as pl
from jax.experimental.pallas import tpu as pltpu

# ----------------------------- static config ------------------------------
H = 32             # config.hidden_size
HEADS = 4          # config.num_attention_heads
L = 16             # max_len
N_E = 4            # entities per document
BASE_NOTA = 8      # base_nota_num
NOTA_FACTOR = 0.1  # nota_rectification_factor
NUM_EX, NUM_Q = 2, 2

TYPE_LABELS = ["NOTA", "relA", "relB"]
NUM_REL = len(TYPE_LABELS) - 1
NUM_CLASSES = 1 + NUM_REL

ENTITY_POSITIONS = [[(1, 2)], [(3, 4), (7, 8)], [(5, 6)], [(9, 10), (12, 13)]]
EXEMPLAR_LABELS = {
    "relA": [[0, 1], [1, 0]],
    "relB": [[2, 3], [3, 2]],
    "NOTA": [[0, 2], [1, 3], [2, 0], [3, 1]],
}
# support rows: non-NOTA relations (type_labels order) first, NOTA rows last
SUPPORT_HTS = (EXEMPLAR_LABELS["relA"] + EXEMPLAR_LABELS["relB"]
               + EXEMPLAR_LABELS["NOTA"])
R_S = len(SUPPORT_HTS)                       # 8 pair rows per support doc
N_NOTA = len(EXEMPLAR_LABELS["NOTA"])        # 4 NOTA rows per support doc
QUERY_HTS = [[i, j] for i in range(N_E) for j in range(N_E) if i != j]
R_Q = len(QUERY_HTS)                         # 12 pair rows per query doc

_CompilerParams = getattr(pltpu, "CompilerParams", None)
if _CompilerParams is None:                  # older jax naming fallback
    _CompilerParams = getattr(pltpu, "TPUCompilerParams")


# ------------------- shared in-kernel per-document math --------------------
def _doc_pair_features(seq, att_lf, m_mask, m_mean, sel_h, sel_t, head_pool,
                       wcat, bcat):
    """Entity gather + pair feature extraction for one document (all in VMEM).

    seq       : (L, H)          encoder sequence output
    att_lf    : (L, HEADS*L)    attention, att_lf[l, h*L + k] = att[h, l, k]
    m_mask    : (N_E, L)        1.0 at mention start positions (<L)
    m_mean    : (N_E, L)        m_mask / mention count
    sel_h/t   : (R, N_E)        one-hot head/tail entity selection per pair
    head_pool : (HEADS*L, L)    mean-over-heads pooling matrix (1/HEADS blocks)
    wcat      : (4H, 2H)        block-diag fused head/tail extractor weights
    bcat      : (1, 2H)         [b_head | b_tail]
    returns   : (R, 2H)         [tanh(head_extractor) | tanh(tail_extractor)]
    """
    # entity embeddings: logsumexp over mention starts (masked-matmul form;
    # single-mention entities reduce to the plain row, zero-mention -> 0)
    counts = jnp.sum(m_mask, axis=-1, keepdims=True)                     # (N_E,1)
    e_emb = jnp.log(jnp.maximum(
        jnp.dot(m_mask, jnp.exp(seq), preferred_element_type=jnp.float32),
        1e-30))                                                          # (N_E,H)
    e_emb = jnp.where(counts > 0, e_emb, 0.0)
    # entity attentions: mean over mention starts, flattened over (head,key)
    e_att = jnp.dot(m_mean, att_lf, preferred_element_type=jnp.float32)  # (N_E,HL)

    # per-pair head/tail gathers as one-hot matmuls (kept on the MXU, no XLA
    # gather HLOs between kernels)
    h_att = jnp.dot(sel_h, e_att, preferred_element_type=jnp.float32)    # (R,HL)
    t_att = jnp.dot(sel_t, e_att, preferred_element_type=jnp.float32)
    ht_att = jnp.dot(h_att * t_att, head_pool,
                     preferred_element_type=jnp.float32)                 # (R,L)
    l1 = jnp.sum(jnp.abs(ht_att), axis=-1, keepdims=True)
    ht_att = ht_att / jnp.maximum(l1, 1e-12)                             # F.normalize p=1

    rs = jnp.dot(ht_att, seq, preferred_element_type=jnp.float32)        # (R,H)
    hs = jnp.dot(sel_h, e_emb, preferred_element_type=jnp.float32)       # (R,H)
    ts = jnp.dot(sel_t, e_emb, preferred_element_type=jnp.float32)       # (R,H)

    # single fused MXU push: [hs|rs|ts|rs] (R,4H=128) @ block-diag (128,2H)
    x = jnp.concatenate([hs, rs, ts, rs], axis=-1)                       # (R,4H)
    return jnp.tanh(jnp.dot(x, wcat, preferred_element_type=jnp.float32)
                    + bcat)                                              # (R,2H)


# ---------------- kernel 1: support episode -> prototypes ------------------
def _support_kernel(seq_ref, att_ref, mmask_ref, mmean_ref, selh_ref, selt_ref,
                    relagg_ref, hpool_ref, wcat_ref, bcat_ref, nbase_ref,
                    prel_ref, pnota_ref, rel_sum, nota_buf):
    d = pl.program_id(0)
    feats = _doc_pair_features(seq_ref[0], att_ref[0], mmask_ref[0],
                               mmean_ref[0], selh_ref[...], selt_ref[...],
                               hpool_ref[...], wcat_ref[...], bcat_ref[...])

    @pl.when(d == 0)
    def _():
        rel_sum[...] = jnp.zeros_like(rel_sum)

    # rel_agg already carries 1/(NUM_EX*rows_per_rel): accumulated sum == mean
    rel_sum[...] += jnp.dot(relagg_ref[...], feats,
                            preferred_element_type=jnp.float32)
    # stash this document's NOTA pair features in VMEM (needed for softmax)
    nota_buf[d] = feats[R_S - N_NOTA:, :]

    @pl.when(d == pl.num_programs(0) - 1)
    def _():
        protos = rel_sum[...]                                    # (NUM_REL, 2H)
        prel_ref[...] = protos
        base = nbase_ref[...]                                    # (BASE_NOTA, 2H)
        nota = nota_buf[...].reshape(NUM_EX * N_NOTA, 2 * H)     # (M, 2H)
        # exact folding of s1 - s2 (linearity of dot): one matmul fewer
        diff = base - jnp.sum(protos, axis=0, keepdims=True)
        logits = jax.lax.dot_general(diff, nota, (((1,), (1,)), ((), ())),
                                     preferred_element_type=jnp.float32)
        alpha = jax.nn.softmax(logits, axis=-1)
        corr = jnp.dot(alpha, nota, preferred_element_type=jnp.float32)
        pnota_ref[...] = (1.0 - NOTA_FACTOR) * base + NOTA_FACTOR * corr


def support_prototypes(seq, att_lf, m_mask, m_mean, sel_h, sel_t, rel_agg,
                       head_pool, wcat, bcat, nota_base):
    def const2d(shape):
        return pl.BlockSpec(shape, lambda d: (0, 0))

    return pl.pallas_call(
        _support_kernel,
        out_shape=(jax.ShapeDtypeStruct((NUM_REL, 2 * H), jnp.float32),
                   jax.ShapeDtypeStruct((BASE_NOTA, 2 * H), jnp.float32)),
        grid_spec=pltpu.PrefetchScalarGridSpec(
            num_scalar_prefetch=0,
            grid=(NUM_EX,),
            in_specs=[
                pl.BlockSpec((1, L, H), lambda d: (d, 0, 0)),
                pl.BlockSpec((1, L, HEADS * L), lambda d: (d, 0, 0)),
                pl.BlockSpec((1, N_E, L), lambda d: (d, 0, 0)),
                pl.BlockSpec((1, N_E, L), lambda d: (d, 0, 0)),
                const2d((R_S, N_E)),
                const2d((R_S, N_E)),
                const2d((NUM_REL, R_S)),
                const2d((HEADS * L, L)),
                const2d((4 * H, 2 * H)),
                const2d((1, 2 * H)),
                const2d((BASE_NOTA, 2 * H)),
            ],
            out_specs=[const2d((NUM_REL, 2 * H)),
                       const2d((BASE_NOTA, 2 * H))],
            scratch_shapes=[pltpu.VMEM((NUM_REL, 2 * H), jnp.float32),
                            pltpu.VMEM((NUM_EX, N_NOTA, 2 * H), jnp.float32)],
        ),
        compiler_params=_CompilerParams(dimension_semantics=("arbitrary",)),
    )(seq, att_lf, m_mask, m_mean, sel_h, sel_t, rel_agg, head_pool, wcat,
      bcat, nota_base)


# --------------- kernel 2: query pair features + scoring -------------------
def _query_kernel(seq_ref, att_ref, mmask_ref, mmean_ref, selh_ref, selt_ref,
                  hpool_ref, wcat_ref, bcat_ref, pnota_ref, prel_ref,
                  scores_ref):
    feats = _doc_pair_features(seq_ref[0], att_ref[0], mmask_ref[0],
                               mmean_ref[0], selh_ref[...], selt_ref[...],
                               hpool_ref[...], wcat_ref[...], bcat_ref[...])
    contract = (((1,), (1,)), ((), ()))
    s_nota = jax.lax.dot_general(feats, pnota_ref[...], contract,
                                 preferred_element_type=jnp.float32)  # (R,BASE)
    s_rel = jax.lax.dot_general(feats, prel_ref[...], contract,
                                preferred_element_type=jnp.float32)   # (R,NUM_REL)
    nota_max = jnp.max(s_nota, axis=-1, keepdims=True)                # (R,1)
    scores_ref[0] = jnp.concatenate([nota_max, s_rel], axis=-1)       # (R,C)


def query_scores(seq, att_lf, m_mask, m_mean, sel_h, sel_t, head_pool, wcat,
                 bcat, proto_nota, proto_rel):
    def const2d(shape):
        return pl.BlockSpec(shape, lambda q: (0, 0))

    return pl.pallas_call(
        _query_kernel,
        out_shape=jax.ShapeDtypeStruct((NUM_Q, R_Q, NUM_CLASSES), jnp.float32),
        grid_spec=pltpu.PrefetchScalarGridSpec(
            num_scalar_prefetch=0,
            grid=(NUM_Q,),
            in_specs=[
                pl.BlockSpec((1, L, H), lambda q: (q, 0, 0)),
                pl.BlockSpec((1, L, HEADS * L), lambda q: (q, 0, 0)),
                pl.BlockSpec((1, N_E, L), lambda q: (q, 0, 0)),
                pl.BlockSpec((1, N_E, L), lambda q: (q, 0, 0)),
                const2d((R_Q, N_E)),
                const2d((R_Q, N_E)),
                const2d((HEADS * L, L)),
                const2d((4 * H, 2 * H)),
                const2d((1, 2 * H)),
                const2d((BASE_NOTA, 2 * H)),
                const2d((NUM_REL, 2 * H)),
            ],
            out_specs=pl.BlockSpec((1, R_Q, NUM_CLASSES), lambda q: (q, 0, 0)),
        ),
        compiler_params=_CompilerParams(dimension_semantics=("parallel",)),
    )(seq, att_lf, m_mask, m_mean, sel_h, sel_t, head_pool, wcat, bcat,
      proto_nota, proto_rel)


# ---------------------------- host-side tables ------------------------------
def _mention_tables(entity_positions, num_docs):
    mask = np.zeros((num_docs, N_E, L), np.float32)
    for e, entity in enumerate(entity_positions):
        for (s, _end) in entity:
            if s < L:
                mask[:, e, s] = 1.0
    cnt = np.maximum(mask.sum(-1, keepdims=True), 1.0)
    return jnp.asarray(mask), jnp.asarray(mask / cnt)


def _selection(hts):
    sel_h = np.zeros((len(hts), N_E), np.float32)
    sel_t = np.zeros((len(hts), N_E), np.float32)
    for r, (h, t) in enumerate(hts):
        sel_h[r, h] = 1.0
        sel_t[r, t] = 1.0
    return jnp.asarray(sel_h), jnp.asarray(sel_t)


def _rel_aggregation():
    agg = np.zeros((NUM_REL, R_S), np.float32)
    row = 0
    for k, rel in enumerate(TYPE_LABELS[1:]):
        n = len(EXEMPLAR_LABELS[rel])
        agg[k, row:row + n] = 1.0 / (NUM_EX * n)   # accumulated sum == mean
        row += n
    return jnp.asarray(agg)


@jax.jit
def encoder_forward(ex_seq, ex_att, q_seq, q_att, nota_base, wcat, bcat,
                    ex_mask, ex_mean, q_mask, q_mean,
                    sel_h_s, sel_t_s, sel_h_q, sel_t_q, rel_agg, head_pool):
    # lane-friendly attention layout: att_lf[d, l, h*L + k] = att[d, h, l, k]
    ex_att_lf = jnp.transpose(ex_att, (0, 2, 1, 3)).reshape(NUM_EX, L, HEADS * L)
    q_att_lf = jnp.transpose(q_att, (0, 2, 1, 3)).reshape(NUM_Q, L, HEADS * L)

    # TODO(synk): exemplar-only ht_att rectification (relation_to_context_attention
    # + data-dependent top-k) needs the pretrained relation model; the base
    # ht_att path is used for all exemplar pairs (same as NOTA / query paths).
    proto_rel, proto_nota = support_prototypes(
        ex_seq, ex_att_lf, ex_mask, ex_mean, sel_h_s, sel_t_s, rel_agg,
        head_pool, wcat, bcat, nota_base)
    # NOTE: the query-side "prototype refinement" loop in the reference only
    # reassigns a loop variable and has no observable effect; omitted.
    scores = query_scores(
        q_seq, q_att_lf, q_mask, q_mean, sel_h_q, sel_t_q, head_pool, wcat,
        bcat, proto_nota, proto_rel)
    return proto_nota, proto_rel, scores


if __name__ == "__main__":
    key = jax.random.PRNGKey(0)
    ks = iter(jax.random.split(key, 16))

    # Linear weights stored transposed: (in=2H, out=H) so x @ W + b matches
    # torch's x @ W.T + b.
    w_head = 0.05 * jax.random.normal(next(ks), (2 * H, H), jnp.float32)
    b_head = 0.05 * jax.random.normal(next(ks), (1, H), jnp.float32)
    w_tail = 0.05 * jax.random.normal(next(ks), (2 * H, H), jnp.float32)
    b_tail = 0.05 * jax.random.normal(next(ks), (1, H), jnp.float32)
    nota_embeddings = jax.random.uniform(next(ks), (BASE_NOTA, 2 * H),
                                         jnp.float32, -1.0, 1.0)

    # TODO(synk): self.model / self.relation_model are pretrained transformers
    # (process_long_input); stand in with deterministic synthetic encoder outputs.
    ex_seq = jax.random.normal(next(ks), (NUM_EX, L, H), jnp.float32)
    ex_att = jax.nn.softmax(
        jax.random.normal(next(ks), (NUM_EX, HEADS, L, L), jnp.float32), axis=-1)
    q_seq = jax.random.normal(next(ks), (NUM_Q, L, H), jnp.float32)
    q_att = jax.nn.softmax(
        jax.random.normal(next(ks), (NUM_Q, HEADS, L, L), jnp.float32), axis=-1)

    # fused block-diagonal extractor weight: [hs|rs|ts|rs] @ wcat = [head|tail]
    wcat = jnp.zeros((4 * H, 2 * H), jnp.float32)
    wcat = wcat.at[:2 * H, :H].set(w_head)
    wcat = wcat.at[2 * H:, H:].set(w_tail)
    bcat = jnp.concatenate([b_head, b_tail], axis=-1)

    ex_mask, ex_mean = _mention_tables(ENTITY_POSITIONS, NUM_EX)
    q_mask, q_mean = _mention_tables(ENTITY_POSITIONS, NUM_Q)
    sel_h_s, sel_t_s = _selection(SUPPORT_HTS)
    sel_h_q, sel_t_q = _selection(QUERY_HTS)
    rel_agg = _rel_aggregation()
    head_pool = jnp.asarray(
        np.tile(np.eye(L, dtype=np.float32), (HEADS, 1)) / HEADS)

    proto_nota, proto_rel, scores = encoder_forward(
        ex_seq, ex_att, q_seq, q_att, nota_embeddings, wcat, bcat,
        ex_mask, ex_mean, q_mask, q_mean,
        sel_h_s, sel_t_s, sel_h_q, sel_t_q, rel_agg, head_pool)
    jax.block_until_ready((proto_nota, proto_rel, scores))

    # TODO(synk): ClsLoss.get_label is an external class; use its standard
    # adaptive-threshold-vs-NOTA decision (class score > NOTA score).
    scores_np = np.asarray(jax.device_get(scores))
    all_matches = []
    for q_i in range(NUM_Q):
        preds = scores_np[q_i, :, 1:] > scores_np[q_i, :, :1]
        matches = []
        for r, pair in enumerate(QUERY_HTS):
            for c in range(1, NUM_CLASSES):
                if preds[r, c - 1]:
                    matches.append([pair[0], pair[1], TYPE_LABELS[c]])
        all_matches.append(matches)

    assert np.all(np.isfinite(scores_np))
    assert np.all(np.isfinite(np.asarray(jax.device_get(proto_nota))))
    print("KERNEL_OK")
</pallas_src>

<mosaic_0001>
module attributes {stable_mosaic.version = 11 : i64} {
  func.func @_query_kernel(%arg0: i32, %arg1: memref<1x16x32xf32, #tpu.memory_space<vmem>>, %arg2: memref<1x16x64xf32, #tpu.memory_space<vmem>>, %arg3: memref<1x4x16xf32, #tpu.memory_space<vmem>>, %arg4: memref<1x4x16xf32, #tpu.memory_space<vmem>>, %arg5: memref<12x4xf32, #tpu.memory_space<vmem>>, %arg6: memref<12x4xf32, #tpu.memory_space<vmem>>, %arg7: memref<64x16xf32, #tpu.memory_space<vmem>>, %arg8: memref<128x64xf32, #tpu.memory_space<vmem>>, %arg9: memref<1x64xf32, #tpu.memory_space<vmem>>, %arg10: memref<8x64xf32, #tpu.memory_space<vmem>>, %arg11: memref<2x64xf32, #tpu.memory_space<vmem>>, %arg12: memref<1x12x3xf32, #tpu.memory_space<vmem>>) attributes {dimension_semantics = [#tpu.dimension_semantics<parallel>], iteration_bounds = array<i64: 2>, scalar_prefetch = 0 : i64, scratch_operands = 0 : i64, tpu.core_type = #tpu.core_type<tc>, window_params = [{transform_indices = @transform_0, window_bounds = array<i64: 1, 16, 32>}, {transform_indices = @transform_1, window_bounds = array<i64: 1, 16, 64>}, {transform_indices = @transform_2, window_bounds = array<i64: 1, 4, 16>}, {transform_indices = @transform_3, window_bounds = array<i64: 1, 4, 16>}, {pipeline_mode = #tpu.pipeline_mode<synchronous>, transform_indices = @transform_4, window_bounds = array<i64: 12, 4>}, {pipeline_mode = #tpu.pipeline_mode<synchronous>, transform_indices = @transform_5, window_bounds = array<i64: 12, 4>}, {pipeline_mode = #tpu.pipeline_mode<synchronous>, transform_indices = @transform_6, window_bounds = array<i64: 64, 16>}, {pipeline_mode = #tpu.pipeline_mode<synchronous>, transform_indices = @transform_7, window_bounds = array<i64: 128, 64>}, {pipeline_mode = #tpu.pipeline_mode<synchronous>, transform_indices = @transform_8, window_bounds = array<i64: 1, 64>}, {pipeline_mode = #tpu.pipeline_mode<synchronous>, transform_indices = @transform_9, window_bounds = array<i64: 8, 64>}, {pipeline_mode = #tpu.pipeline_mode<synchronous>, transform_indices = @transform_10, window_bounds = array<i64: 2, 64>}, {transform_indices = @transform_11, window_bounds = array<i64: 1, 12, 3>}]} {
    %c0 = arith.constant 0 : index
    %c0_0 = arith.constant 0 : index
    %c0_1 = arith.constant 0 : index
    %0 = vector.load %arg1[%c0, %c0_0, %c0_1] : memref<1x16x32xf32, #tpu.memory_space<vmem>>, vector<1x16x32xf32>
    %1 = vector.shape_cast %0 : vector<1x16x32xf32> to vector<16x32xf32>
    %c0_2 = arith.constant 0 : index
    %c0_3 = arith.constant 0 : index
    %c0_4 = arith.constant 0 : index
    %2 = vector.load %arg2[%c0_2, %c0_3, %c0_4] : memref<1x16x64xf32, #tpu.memory_space<vmem>>, vector<1x16x64xf32>
    %3 = vector.shape_cast %2 : vector<1x16x64xf32> to vector<16x64xf32>
    %c0_5 = arith.constant 0 : index
    %c0_6 = arith.constant 0 : index
    %c0_7 = arith.constant 0 : index
    %4 = vector.load %arg3[%c0_5, %c0_6, %c0_7] : memref<1x4x16xf32, #tpu.memory_space<vmem>>, vector<1x4x16xf32>
    %5 = vector.shape_cast %4 : vector<1x4x16xf32> to vector<4x16xf32>
    %c0_8 = arith.constant 0 : index
    %c0_9 = arith.constant 0 : index
    %c0_10 = arith.constant 0 : index
    %6 = vector.load %arg4[%c0_8, %c0_9, %c0_10] : memref<1x4x16xf32, #tpu.memory_space<vmem>>, vector<1x4x16xf32>
    %7 = vector.shape_cast %6 : vector<1x4x16xf32> to vector<4x16xf32>
    %c0_11 = arith.constant 0 : index
    %c0_12 = arith.constant 0 : index
    %8 = vector.load %arg5[%c0_11, %c0_12] : memref<12x4xf32, #tpu.memory_space<vmem>>, vector<12x4xf32>
    %c0_13 = arith.constant 0 : index
    %c0_14 = arith.constant 0 : index
    %9 = vector.load %arg6[%c0_13, %c0_14] : memref<12x4xf32, #tpu.memory_space<vmem>>, vector<12x4xf32>
    %c0_15 = arith.constant 0 : index
    %c0_16 = arith.constant 0 : index
    %10 = vector.load %arg7[%c0_15, %c0_16] : memref<64x16xf32, #tpu.memory_space<vmem>>, vector<64x16xf32>
    %c0_17 = arith.constant 0 : index
    %c0_18 = arith.constant 0 : index
    %11 = vector.load %arg8[%c0_17, %c0_18] : memref<128x64xf32, #tpu.memory_space<vmem>>, vector<128x64xf32>
    %c0_19 = arith.constant 0 : index
    %c0_20 = arith.constant 0 : index
    %12 = vector.load %arg9[%c0_19, %c0_20] : memref<1x64xf32, #tpu.memory_space<vmem>>, vector<1x64xf32>
    %cst = arith.constant dense<0.000000e+00> : vector<4xf32>
    %13 = vector.multi_reduction <add>, %5, %cst [1] : vector<4x16xf32> to vector<4xf32>
    %14 = vector.shape_cast %13 : vector<4xf32> to vector<4x1xf32>
    %15 = math.exp %1 : vector<16x32xf32>
    %cst_21 = arith.constant dense<0.000000e+00> : vector<4x32xf32>
    %16 = tpu.matmul %5, %15, %cst_21 {dimension_numbers = #tpu.dot_dimension_numbers<[1], [0], [0], [1], [0, 0, 1, 1], [], []>} : vector<4x16xf32>, vector<16x32xf32>, vector<4x32xf32> -> vector<4x32xf32>
    %cst_22 = arith.constant 1.000000e-30 : f32
    %17 = vector.broadcast %cst_22 : f32 to vector<4x32xf32>
    %18 = arith.maximumf %16, %17 : vector<4x32xf32>
    %19 = math.log %18 : vector<4x32xf32>
    %cst_23 = arith.constant 0.000000e+00 : f32
    %20 = vector.broadcast %cst_23 : f32 to vector<4x1xf32>
    %21 = arith.cmpf ogt, %14, %20 : vector<4x1xf32>
    %cst_24 = arith.constant 0.000000e+00 : f32
    %22 = vector.shape_cast %21 : vector<4x1xi1> to vector<4x1xi1>
    %23 = vector.broadcast %22 : vector<4x1xi1> to vector<4x32xi1>
    %24 = vector.broadcast %cst_24 : f32 to vector<4x32xf32>
    %25 = arith.select %23, %19, %24 : vector<4x32xi1>, vector<4x32xf32>
    %cst_25 = arith.constant dense<0.000000e+00> : vector<4x64xf32>
    %26 = tpu.matmul %7, %3, %cst_25 {dimension_numbers = #tpu.dot_dimension_numbers<[1], [0], [0], [1], [0, 0, 1, 1], [], []>} : vector<4x16xf32>, vector<16x64xf32>, vector<4x64xf32> -> vector<4x64xf32>
    %cst_26 = arith.constant dense<0.000000e+00> : vector<12x64xf32>
    %27 = tpu.matmul %8, %26, %cst_26 {dimension_numbers = #tpu.dot_dimension_numbers<[1], [0], [0], [1], [0, 0, 1, 1], [], []>} : vector<12x4xf32>, vector<4x64xf32>, vector<12x64xf32> -> vector<12x64xf32>
    %cst_27 = arith.constant dense<0.000000e+00> : vector<12x64xf32>
    %28 = tpu.matmul %9, %26, %cst_27 {dimension_numbers = #tpu.dot_dimension_numbers<[1], [0], [0], [1], [0, 0, 1, 1], [], []>} : vector<12x4xf32>, vector<4x64xf32>, vector<12x64xf32> -> vector<12x64xf32>
    %29 = arith.mulf %27, %28 : vector<12x64xf32>
    %cst_28 = arith.constant dense<0.000000e+00> : vector<12x16xf32>
    %30 = tpu.matmul %29, %10, %cst_28 {dimension_numbers = #tpu.dot_dimension_numbers<[1], [0], [0], [1], [0, 0, 1, 1], [], []>} : vector<12x64xf32>, vector<64x16xf32>, vector<12x16xf32> -> vector<12x16xf32>
    %31 = math.absf %30 : vector<12x16xf32>
    %cst_29 = arith.constant dense<0.000000e+00> : vector<12xf32>
    %32 = vector.multi_reduction <add>, %31, %cst_29 [1] : vector<12x16xf32> to vector<12xf32>
    %33 = vector.shape_cast %32 : vector<12xf32> to vector<12x1xf32>
    %cst_30 = arith.constant 9.99999996E-13 : f32
    %34 = vector.broadcast %cst_30 : f32 to vector<12x1xf32>
    %35 = arith.maximumf %33, %34 : vector<12x1xf32>
    %36 = vector.broadcast %35 : vector<12x1xf32> to vector<12x16xf32>
    %37 = arith.divf %30, %36 : vector<12x16xf32>
    %cst_31 = arith.constant dense<0.000000e+00> : vector<12x32xf32>
    %38 = tpu.matmul %37, %1, %cst_31 {dimension_numbers = #tpu.dot_dimension_numbers<[1], [0], [0], [1], [0, 0, 1, 1], [], []>} : vector<12x16xf32>, vector<16x32xf32>, vector<12x32xf32> -> vector<12x32xf32>
    %cst_32 = arith.constant dense<0.000000e+00> : vector<12x32xf32>
    %39 = tpu.matmul %8, %25, %cst_32 {dimension_numbers = #tpu.dot_dimension_numbers<[1], [0], [0], [1], [0, 0, 1, 1], [], []>} : vector<12x4xf32>, vector<4x32xf32>, vector<12x32xf32> -> vector<12x32xf32>
    %cst_33 = arith.constant dense<0.000000e+00> : vector<12x32xf32>
    %40 = tpu.matmul %9, %25, %cst_33 {dimension_numbers = #tpu.dot_dimension_numbers<[1], [0], [0], [1], [0, 0, 1, 1], [], []>} : vector<12x4xf32>, vector<4x32xf32>, vector<12x32xf32> -> vector<12x32xf32>
    %41 = tpu.concatenate %39, %38, %40, %38 in 1 : vector<12x32xf32>, vector<12x32xf32>, vector<12x32xf32>, vector<12x32xf32> -> vector<12x128xf32>
    %cst_34 = arith.constant dense<0.000000e+00> : vector<12x64xf32>
    %42 = tpu.matmul %41, %11, %cst_34 {dimension_numbers = #tpu.dot_dimension_numbers<[1], [0], [0], [1], [0, 0, 1, 1], [], []>} : vector<12x128xf32>, vector<128x64xf32>, vector<12x64xf32> -> vector<12x64xf32>
    %43 = vector.broadcast %12 : vector<1x64xf32> to vector<12x64xf32>
    %44 = arith.addf %42, %43 : vector<12x64xf32>
    %45 = math.tanh %44 : vector<12x64xf32>
    %c0_35 = arith.constant 0 : index
    %c0_36 = arith.constant 0 : index
    %46 = vector.load %arg10[%c0_35, %c0_36] : memref<8x64xf32, #tpu.memory_space<vmem>>, vector<8x64xf32>
    %cst_37 = arith.constant dense<0.000000e+00> : vector<12x8xf32>
    %47 = tpu.matmul %45, %46, %cst_37 {dimension_numbers = #tpu.dot_dimension_numbers<[1], [1], [0], [0], [0, 0, 1, 0], [], []>} : vector<12x64xf32>, vector<8x64xf32>, vector<12x8xf32> -> vector<12x8xf32>
    %c0_38 = arith.constant 0 : index
    %c0_39 = arith.constant 0 : index
    %48 = vector.load %arg11[%c0_38, %c0_39] : memref<2x64xf32, #tpu.memory_space<vmem>>, vector<2x64xf32>
    %cst_40 = arith.constant dense<0.000000e+00> : vector<12x2xf32>
    %49 = tpu.matmul %45, %48, %cst_40 {dimension_numbers = #tpu.dot_dimension_numbers<[1], [1], [0], [0], [0, 0, 1, 0], [], []>} : vector<12x64xf32>, vector<2x64xf32>, vector<12x2xf32> -> vector<12x2xf32>
    %cst_41 = arith.constant dense<0xFF800000> : vector<12xf32>
    %50 = vector.multi_reduction <maximumf>, %47, %cst_41 [1] : vector<12x8xf32> to vector<12xf32>
    %51 = vector.shape_cast %50 : vector<12xf32> to vector<12x1xf32>
    %52 = tpu.concatenate %51, %49 in 1 : vector<12x1xf32>, vector<12x2xf32> -> vector<12x3xf32>
    %c0_42 = arith.constant 0 : index
    %c0_43 = arith.constant 0 : index
    %c0_44 = arith.constant 0 : index
    %53 = vector.load %arg12[%c0_42, %c0_43, %c0_44] : memref<1x12x3xf32, #tpu.memory_space<vmem>>, vector<1x12x3xf32>
    %54 = vector.shape_cast %53 : vector<1x12x3xf32> to vector<12x3xf32>
    %55 = vector.shape_cast %52 : vector<12x3xf32> to vector<1x12x3xf32>
    tpu.vector_store %arg12[%c0_42, %c0_43, %c0_44], %55 {strides = array<i32>} : memref<1x12x3xf32, #tpu.memory_space<vmem>>, vector<1x12x3xf32>,
    return
  }
  func.func @transform_0(%arg0: i32) -> (i32, i32, i32) {
    %c0_i32 = arith.constant 0 : i32
    %c0_i32_0 = arith.constant 0 : i32
    %c0_i32_1 = arith.constant 0 : i32
    return %arg0, %c0_i32, %c0_i32_0 : i32, i32, i32
  }
  func.func @transform_1(%arg0: i32) -> (i32, i32, i32) {
    %c0_i32 = arith.constant 0 : i32
    %c0_i32_0 = arith.constant 0 : i32
    %c0_i32_1 = arith.constant 0 : i32
    return %arg0, %c0_i32, %c0_i32_0 : i32, i32, i32
  }
  func.func @transform_2(%arg0: i32) -> (i32, i32, i32) {
    %c0_i32 = arith.constant 0 : i32
    %c0_i32_0 = arith.constant 0 : i32
    %c0_i32_1 = arith.constant 0 : i32
    return %arg0, %c0_i32, %c0_i32_0 : i32, i32, i32
  }
  func.func @transform_3(%arg0: i32) -> (i32, i32, i32) {
    %c0_i32 = arith.constant 0 : i32
    %c0_i32_0 = arith.constant 0 : i32
    %c0_i32_1 = arith.constant 0 : i32
    return %arg0, %c0_i32, %c0_i32_0 : i32, i32, i32
  }
  func.func @transform_4(%arg0: i32) -> (i32, i32) {
    %c0_i32 = arith.constant 0 : i32
    %c0_i32_0 = arith.constant 0 : i32
    %c0_i32_1 = arith.constant 0 : i32
    return %c0_i32, %c0_i32_0 : i32, i32
  }
  func.func @transform_5(%arg0: i32) -> (i32, i32) {
    %c0_i32 = arith.constant 0 : i32
    %c0_i32_0 = arith.constant 0 : i32
    %c0_i32_1 = arith.constant 0 : i32
    return %c0_i32, %c0_i32_0 : i32, i32
  }
  func.func @transform_6(%arg0: i32) -> (i32, i32) {
    %c0_i32 = arith.constant 0 : i32
    %c0_i32_0 = arith.constant 0 : i32
    %c0_i32_1 = arith.constant 0 : i32
    return %c0_i32, %c0_i32_0 : i32, i32
  }
  func.func @transform_7(%arg0: i32) -> (i32, i32) {
    %c0_i32 = arith.constant 0 : i32
    %c0_i32_0 = arith.constant 0 : i32
    %c0_i32_1 = arith.constant 0 : i32
    return %c0_i32, %c0_i32_0 : i32, i32
  }
  func.func @transform_8(%arg0: i32) -> (i32, i32) {
    %c0_i32 = arith.constant 0 : i32
    %c0_i32_0 = arith.constant 0 : i32
    %c0_i32_1 = arith.constant 0 : i32
    return %c0_i32, %c0_i32_0 : i32, i32
  }
  func.func @transform_9(%arg0: i32) -> (i32, i32) {
    %c0_i32 = arith.constant 0 : i32
    %c0_i32_0 = arith.constant 0 : i32
    %c0_i32_1 = arith.constant 0 : i32
    return %c0_i32, %c0_i32_0 : i32, i32
  }
  func.func @transform_10(%arg0: i32) -> (i32, i32) {
    %c0_i32 = arith.constant 0 : i32
    %c0_i32_0 = arith.constant 0 : i32
    %c0_i32_1 = arith.constant 0 : i32
    return %c0_i32, %c0_i32_0 : i32, i32
  }
  func.func @transform_11(%arg0: i32) -> (i32, i32, i32) {
    %c0_i32 = arith.constant 0 : i32
    %c0_i32_0 = arith.constant 0 : i32
    %c0_i32_1 = arith.constant 0 : i32
    return %arg0, %c0_i32, %c0_i32_0 : i32, i32, i32
  }
}

module attributes {stable_mosaic.version = 11 : i64} {
  func.func @_support_kernel(%arg0: i32, %arg1: memref<1x16x32xf32, #tpu.memory_space<vmem>>, %arg2: memref<1x16x64xf32, #tpu.memory_space<vmem>>, %arg3: memref<1x4x16xf32, #tpu.memory_space<vmem>>, %arg4: memref<1x4x16xf32, #tpu.memory_space<vmem>>, %arg5: memref<8x4xf32, #tpu.memory_space<vmem>>, %arg6: memref<8x4xf32, #tpu.memory_space<vmem>>, %arg7: memref<2x8xf32, #tpu.memory_space<vmem>>, %arg8: memref<64x16xf32, #tpu.memory_space<vmem>>, %arg9: memref<128x64xf32, #tpu.memory_space<vmem>>, %arg10: memref<1x64xf32, #tpu.memory_space<vmem>>, %arg11: memref<8x64xf32, #tpu.memory_space<vmem>>, %arg12: memref<2x64xf32, #tpu.memory_space<vmem>>, %arg13: memref<8x64xf32, #tpu.memory_space<vmem>>, %arg14: memref<2x64xf32, #tpu.memory_space<vmem>>, %arg15: memref<2x4x64xf32, #tpu.memory_space<vmem>>) attributes {dimension_semantics = [#tpu.dimension_semantics<arbitrary>], iteration_bounds = array<i64: 2>, scalar_prefetch = 0 : i64, scratch_operands = 2 : i64, tpu.core_type = #tpu.core_type<tc>, window_params = [{transform_indices = @transform_0, window_bounds = array<i64: 1, 16, 32>}, {transform_indices = @transform_1, window_bounds = array<i64: 1, 16, 64>}, {transform_indices = @transform_2, window_bounds = array<i64: 1, 4, 16>}, {transform_indices = @transform_3, window_bounds = array<i64: 1, 4, 16>}, {pipeline_mode = #tpu.pipeline_mode<synchronous>, transform_indices = @transform_4, window_bounds = array<i64: 8, 4>}, {pipeline_mode = #tpu.pipeline_mode<synchronous>, transform_indices = @transform_5, window_bounds = array<i64: 8, 4>}, {pipeline_mode = #tpu.pipeline_mode<synchronous>, transform_indices = @transform_6, window_bounds = array<i64: 2, 8>}, {pipeline_mode = #tpu.pipeline_mode<synchronous>, transform_indices = @transform_7, window_bounds = array<i64: 64, 16>}, {pipeline_mode = #tpu.pipeline_mode<synchronous>, transform_indices = @transform_8, window_bounds = array<i64: 128, 64>}, {pipeline_mode = #tpu.pipeline_mode<synchronous>, transform_indices = @transform_9, window_bounds = array<i64: 1, 64>}, {pipeline_mode = #tpu.pipeline_mode<synchronous>, transform_indices = @transform_10, window_bounds = array<i64: 8, 64>}, {pipeline_mode = #tpu.pipeline_mode<synchronous>, transform_indices = @transform_11, window_bounds = array<i64: 2, 64>}, {pipeline_mode = #tpu.pipeline_mode<synchronous>, transform_indices = @transform_12, window_bounds = array<i64: 8, 64>}]} {
    %c0 = arith.constant 0 : index
    %c0_0 = arith.constant 0 : index
    %c0_1 = arith.constant 0 : index
    %0 = vector.load %arg1[%c0, %c0_0, %c0_1] : memref<1x16x32xf32, #tpu.memory_space<vmem>>, vector<1x16x32xf32>
    %1 = vector.shape_cast %0 : vector<1x16x32xf32> to vector<16x32xf32>
    %c0_2 = arith.constant 0 : index
    %c0_3 = arith.constant 0 : index
    %c0_4 = arith.constant 0 : index
    %2 = vector.load %arg2[%c0_2, %c0_3, %c0_4] : memref<1x16x64xf32, #tpu.memory_space<vmem>>, vector<1x16x64xf32>
    %3 = vector.shape_cast %2 : vector<1x16x64xf32> to vector<16x64xf32>
    %c0_5 = arith.constant 0 : index
    %c0_6 = arith.constant 0 : index
    %c0_7 = arith.constant 0 : index
    %4 = vector.load %arg3[%c0_5, %c0_6, %c0_7] : memref<1x4x16xf32, #tpu.memory_space<vmem>>, vector<1x4x16xf32>
    %5 = vector.shape_cast %4 : vector<1x4x16xf32> to vector<4x16xf32>
    %c0_8 = arith.constant 0 : index
    %c0_9 = arith.constant 0 : index
    %c0_10 = arith.constant 0 : index
    %6 = vector.load %arg4[%c0_8, %c0_9, %c0_10] : memref<1x4x16xf32, #tpu.memory_space<vmem>>, vector<1x4x16xf32>
    %7 = vector.shape_cast %6 : vector<1x4x16xf32> to vector<4x16xf32>
    %c0_11 = arith.constant 0 : index
    %c0_12 = arith.constant 0 : index
    %8 = vector.load %arg5[%c0_11, %c0_12] : memref<8x4xf32, #tpu.memory_space<vmem>>, vector<8x4xf32>
    %c0_13 = arith.constant 0 : index
    %c0_14 = arith.constant 0 : index
    %9 = vector.load %arg6[%c0_13, %c0_14] : memref<8x4xf32, #tpu.memory_space<vmem>>, vector<8x4xf32>
    %c0_15 = arith.constant 0 : index
    %c0_16 = arith.constant 0 : index
    %10 = vector.load %arg8[%c0_15, %c0_16] : memref<64x16xf32, #tpu.memory_space<vmem>>, vector<64x16xf32>
    %c0_17 = arith.constant 0 : index
    %c0_18 = arith.constant 0 : index
    %11 = vector.load %arg9[%c0_17, %c0_18] : memref<128x64xf32, #tpu.memory_space<vmem>>, vector<128x64xf32>
    %c0_19 = arith.constant 0 : index
    %c0_20 = arith.constant 0 : index
    %12 = vector.load %arg10[%c0_19, %c0_20] : memref<1x64xf32, #tpu.memory_space<vmem>>, vector<1x64xf32>
    %cst = arith.constant dense<0.000000e+00> : vector<4xf32>
    %13 = vector.multi_reduction <add>, %5, %cst [1] : vector<4x16xf32> to vector<4xf32>
    %14 = vector.shape_cast %13 : vector<4xf32> to vector<4x1xf32>
    %15 = math.exp %1 : vector<16x32xf32>
    %cst_21 = arith.constant dense<0.000000e+00> : vector<4x32xf32>
    %16 = tpu.matmul %5, %15, %cst_21 {dimension_numbers = #tpu.dot_dimension_numbers<[1], [0], [0], [1], [0, 0, 1, 1], [], []>} : vector<4x16xf32>, vector<16x32xf32>, vector<4x32xf32> -> vector<4x32xf32>
    %cst_22 = arith.constant 1.000000e-30 : f32
    %17 = vector.broadcast %cst_22 : f32 to vector<4x32xf32>
    %18 = arith.maximumf %16, %17 : vector<4x32xf32>
    %19 = math.log %18 : vector<4x32xf32>
    %cst_23 = arith.constant 0.000000e+00 : f32
    %20 = vector.broadcast %cst_23 : f32 to vector<4x1xf32>
    %21 = arith.cmpf ogt, %14, %20 : vector<4x1xf32>
    %cst_24 = arith.constant 0.000000e+00 : f32
    %22 = vector.shape_cast %21 : vector<4x1xi1> to vector<4x1xi1>
    %23 = vector.broadcast %22 : vector<4x1xi1> to vector<4x32xi1>
    %24 = vector.broadcast %cst_24 : f32 to vector<4x32xf32>
    %25 = arith.select %23, %19, %24 : vector<4x32xi1>, vector<4x32xf32>
    %cst_25 = arith.constant dense<0.000000e+00> : vector<4x64xf32>
    %26 = tpu.matmul %7, %3, %cst_25 {dimension_numbers = #tpu.dot_dimension_numbers<[1], [0], [0], [1], [0, 0, 1, 1], [], []>} : vector<4x16xf32>, vector<16x64xf32>, vector<4x64xf32> -> vector<4x64xf32>
    %cst_26 = arith.constant dense<0.000000e+00> : vector<8x64xf32>
    %27 = tpu.matmul %8, %26, %cst_26 {dimension_numbers = #tpu.dot_dimension_numbers<[1], [0], [0], [1], [0, 0, 1, 1], [], []>} : vector<8x4xf32>, vector<4x64xf32>, vector<8x64xf32> -> vector<8x64xf32>
    %cst_27 = arith.constant dense<0.000000e+00> : vector<8x64xf32>
    %28 = tpu.matmul %9, %26, %cst_27 {dimension_numbers = #tpu.dot_dimension_numbers<[1], [0], [0], [1], [0, 0, 1, 1], [], []>} : vector<8x4xf32>, vector<4x64xf32>, vector<8x64xf32> -> vector<8x64xf32>
    %29 = arith.mulf %27, %28 : vector<8x64xf32>
    %cst_28 = arith.constant dense<0.000000e+00> : vector<8x16xf32>
    %30 = tpu.matmul %29, %10, %cst_28 {dimension_numbers = #tpu.dot_dimension_numbers<[1], [0], [0], [1], [0, 0, 1, 1], [], []>} : vector<8x64xf32>, vector<64x16xf32>, vector<8x16xf32> -> vector<8x16xf32>
    %31 = math.absf %30 : vector<8x16xf32>
    %cst_29 = arith.constant dense<0.000000e+00> : vector<8xf32>
    %32 = vector.multi_reduction <add>, %31, %cst_29 [1] : vector<8x16xf32> to vector<8xf32>
    %33 = vector.shape_cast %32 : vector<8xf32> to vector<8x1xf32>
    %cst_30 = arith.constant 9.99999996E-13 : f32
    %34 = vector.broadcast %cst_30 : f32 to vector<8x1xf32>
    %35 = arith.maximumf %33, %34 : vector<8x1xf32>
    %36 = vector.broadcast %35 : vector<8x1xf32> to vector<8x16xf32>
    %37 = arith.divf %30, %36 : vector<8x16xf32>
    %cst_31 = arith.constant dense<0.000000e+00> : vector<8x32xf32>
    %38 = tpu.matmul %37, %1, %cst_31 {dimension_numbers = #tpu.dot_dimension_numbers<[1], [0], [0], [1], [0, 0, 1, 1], [], []>} : vector<8x16xf32>, vector<16x32xf32>, vector<8x32xf32> -> vector<8x32xf32>
    %cst_32 = arith.constant dense<0.000000e+00> : vector<8x32xf32>
    %39 = tpu.matmul %8, %25, %cst_32 {dimension_numbers = #tpu.dot_dimension_numbers<[1], [0], [0], [1], [0, 0, 1, 1], [], []>} : vector<8x4xf32>, vector<4x32xf32>, vector<8x32xf32> -> vector<8x32xf32>
    %cst_33 = arith.constant dense<0.000000e+00> : vector<8x32xf32>
    %40 = tpu.matmul %9, %25, %cst_33 {dimension_numbers = #tpu.dot_dimension_numbers<[1], [0], [0], [1], [0, 0, 1, 1], [], []>} : vector<8x4xf32>, vector<4x32xf32>, vector<8x32xf32> -> vector<8x32xf32>
    %41 = tpu.concatenate %39, %38, %40, %38 in 1 : vector<8x32xf32>, vector<8x32xf32>, vector<8x32xf32>, vector<8x32xf32> -> vector<8x128xf32>
    %cst_34 = arith.constant dense<0.000000e+00> : vector<8x64xf32>
    %42 = tpu.matmul %41, %11, %cst_34 {dimension_numbers = #tpu.dot_dimension_numbers<[1], [0], [0], [1], [0, 0, 1, 1], [], []>} : vector<8x128xf32>, vector<128x64xf32>, vector<8x64xf32> -> vector<8x64xf32>
    %43 = vector.broadcast %12 : vector<1x64xf32> to vector<8x64xf32>
    %44 = arith.addf %42, %43 : vector<8x64xf32>
    %45 = math.tanh %44 : vector<8x64xf32>
    %c0_i32 = arith.constant 0 : i32
    %46 = arith.cmpi eq, %arg0, %c0_i32 : i32
    %47 = arith.extui %46 : i1 to i32
    %c0_i32_35 = arith.constant 0 : i32
    %48 = arith.cmpi ne, %47, %c0_i32_35 : i32
    scf.if %48 {
      %cst_46 = arith.constant 0.000000e+00 : f32
      %62 = vector.broadcast %cst_46 : f32 to vector<2x64xf32>
      %c0_47 = arith.constant 0 : index
      %c0_48 = arith.constant 0 : index
      %63 = vector.load %arg14[%c0_47, %c0_48] : memref<2x64xf32, #tpu.memory_space<vmem>>, vector<2x64xf32>
      tpu.vector_store %arg14[%c0_47, %c0_48], %62 {strides = array<i32>} : memref<2x64xf32, #tpu.memory_space<vmem>>, vector<2x64xf32>,
    } else {
    }
    %c0_36 = arith.constant 0 : index
    %c0_37 = arith.constant 0 : index
    %49 = vector.load %arg14[%c0_36, %c0_37] : memref<2x64xf32, #tpu.memory_space<vmem>>, vector<2x64xf32>
    %c0_38 = arith.constant 0 : index
    %c0_39 = arith.constant 0 : index
    %50 = vector.load %arg7[%c0_38, %c0_39] : memref<2x8xf32, #tpu.memory_space<vmem>>, vector<2x8xf32>
    %cst_40 = arith.constant dense<0.000000e+00> : vector<2x64xf32>
    %51 = tpu.matmul %50, %45, %cst_40 {dimension_numbers = #tpu.dot_dimension_numbers<[1], [0], [0], [1], [0, 0, 1, 1], [], []>} : vector<2x8xf32>, vector<8x64xf32>, vector<2x64xf32> -> vector<2x64xf32>
    %52 = arith.addf %49, %51 : vector<2x64xf32>
    %c0_41 = arith.constant 0 : index
    %c0_42 = arith.constant 0 : index
    %53 = vector.load %arg14[%c0_41, %c0_42] : memref<2x64xf32, #tpu.memory_space<vmem>>, vector<2x64xf32>
    tpu.vector_store %arg14[%c0_41, %c0_42], %52 {strides = array<i32>} : memref<2x64xf32, #tpu.memory_space<vmem>>, vector<2x64xf32>,
    %54 = vector.extract_strided_slice %45 {offsets = [4, 0], sizes = [4, 64], strides = [1, 1]} : vector<8x64xf32> to vector<4x64xf32>
    %55 = arith.index_cast %arg0 : i32 to index
    %c0_43 = arith.constant 0 : index
    %c0_44 = arith.constant 0 : index
    %56 = vector.load %arg15[%55, %c0_43, %c0_44] : memref<2x4x64xf32, #tpu.memory_space<vmem>>, vector<1x4x64xf32>
    %57 = vector.shape_cast %56 : vector<1x4x64xf32> to vector<4x64xf32>
    %58 = vector.shape_cast %54 : vector<4x64xf32> to vector<1x4x64xf32>
    tpu.vector_store %arg15[%55, %c0_43, %c0_44], %58 {strides = array<i32>} : memref<2x4x64xf32, #tpu.memory_space<vmem>>, vector<1x4x64xf32>,
    %c1_i32 = arith.constant 1 : i32
    %59 = arith.cmpi eq, %arg0, %c1_i32 : i32
    %60 = arith.extui %59 : i1 to i32
    %c0_i32_45 = arith.constant 0 : i32
    %61 = arith.cmpi ne, %60, %c0_i32_45 : i32
    scf.if %61 {
      %c0_46 = arith.constant 0 : index
      %c0_47 = arith.constant 0 : index
      %62 = vector.load %arg14[%c0_46, %c0_47] : memref<2x64xf32, #tpu.memory_space<vmem>>, vector<2x64xf32>
      %c0_48 = arith.constant 0 : index
      %c0_49 = arith.constant 0 : index
      %63 = vector.load %arg12[%c0_48, %c0_49] : memref<2x64xf32, #tpu.memory_space<vmem>>, vector<2x64xf32>
      tpu.vector_store %arg12[%c0_48, %c0_49], %62 {strides = array<i32>} : memref<2x64xf32, #tpu.memory_space<vmem>>, vector<2x64xf32>,
      %c0_50 = arith.constant 0 : index
      %c0_51 = arith.constant 0 : index
      %64 = vector.load %arg11[%c0_50, %c0_51] : memref<8x64xf32, #tpu.memory_space<vmem>>, vector<8x64xf32>
      %c0_52 = arith.constant 0 : index
      %c0_53 = arith.constant 0 : index
      %c0_54 = arith.constant 0 : index
      %65 = vector.load %arg15[%c0_52, %c0_53, %c0_54] : memref<2x4x64xf32, #tpu.memory_space<vmem>>, vector<2x4x64xf32>
      %66 = vector.shape_cast %65 : vector<2x4x64xf32> to vector<8x64xf32>
      %cst_55 = arith.constant dense<0.000000e+00> : vector<64xf32>
      %67 = vector.multi_reduction <add>, %62, %cst_55 [0] : vector<2x64xf32> to vector<64xf32>
      %68 = vector.shape_cast %67 : vector<64xf32> to vector<1x64xf32>
      %69 = vector.broadcast %68 : vector<1x64xf32> to vector<8x64xf32>
      %70 = arith.subf %64, %69 : vector<8x64xf32>
      %cst_56 = arith.constant dense<0.000000e+00> : vector<8x8xf32>
      %71 = tpu.matmul %70, %66, %cst_56 {dimension_numbers = #tpu.dot_dimension_numbers<[1], [1], [0], [0], [0, 0, 1, 0], [], []>} : vector<8x64xf32>, vector<8x64xf32>, vector<8x8xf32> -> vector<8x8xf32>
      %cst_57 = arith.constant dense<0xFF800000> : vector<8xf32>
      %72 = vector.multi_reduction <maximumf>, %71, %cst_57 [1] : vector<8x8xf32> to vector<8xf32>
      %cst_58 = arith.constant 0xFF800000 : f32
      %73 = vector.broadcast %cst_58 : f32 to vector<8xf32>
      %74 = arith.maximumf %73, %72 : vector<8xf32>
      %75 = vector.shape_cast %74 : vector<8xf32> to vector<8x1xf32>
      %76 = vector.broadcast %75 : vector<8x1xf32> to vector<8x8xf32>
      %77 = arith.subf %71, %76 : vector<8x8xf32>
      %78 = math.exp %77 : vector<8x8xf32>
      %cst_59 = arith.constant dense<0.000000e+00> : vector<8xf32>
      %79 = vector.multi_reduction <add>, %78, %cst_59 [1] : vector<8x8xf32> to vector<8xf32>
      %80 = vector.shape_cast %79 : vector<8xf32> to vector<8x1xf32>
      %81 = vector.broadcast %80 : vector<8x1xf32> to vector<8x8xf32>
      %82 = arith.divf %78, %81 : vector<8x8xf32>
      %cst_60 = arith.constant dense<0.000000e+00> : vector<8x64xf32>
      %83 = tpu.matmul %82, %66, %cst_60 {dimension_numbers = #tpu.dot_dimension_numbers<[1], [0], [0], [1], [0, 0, 1, 1], [], []>} : vector<8x8xf32>, vector<8x64xf32>, vector<8x64xf32> -> vector<8x64xf32>
      %cst_61 = arith.constant 0.899999976 : f32
      %84 = vector.broadcast %cst_61 : f32 to vector<8x64xf32>
      %85 = arith.mulf %84, %64 : vector<8x64xf32>
      %cst_62 = arith.constant 1.000000e-01 : f32
      %86 = vector.broadcast %cst_62 : f32 to vector<8x64xf32>
      %87 = arith.mulf %86, %83 : vector<8x64xf32>
      %88 = arith.addf %85, %87 : vector<8x64xf32>
      %c0_63 = arith.constant 0 : index
      %c0_64 = arith.constant 0 : index
      %89 = vector.load %arg13[%c0_63, %c0_64] : memref<8x64xf32, #tpu.memory_space<vmem>>, vector<8x64xf32>
      tpu.vector_store %arg13[%c0_63, %c0_64], %88 {strides = array<i32>} : memref<8x64xf32, #tpu.memory_space<vmem>>, vector<8x64xf32>,
    } else {
    }
    return
  }
  func.func @transform_0(%arg0: i32) -> (i32, i32, i32) {
    %c0_i32 = arith.constant 0 : i32
    %c0_i32_0 = arith.constant 0 : i32
    %c0_i32_1 = arith.constant 0 : i32
    return %arg0, %c0_i32, %c0_i32_0 : i32, i32, i32
  }
  func.func @transform_1(%arg0: i32) -> (i32, i32, i32) {
    %c0_i32 = arith.constant 0 : i32
    %c0_i32_0 = arith.constant 0 : i32
    %c0_i32_1 = arith.constant 0 : i32
    return %arg0, %c0_i32, %c0_i32_0 : i32, i32, i32
  }
  func.func @transform_2(%arg0: i32) -> (i32, i32, i32) {
    %c0_i32 = arith.constant 0 : i32
    %c0_i32_0 = arith.constant 0 : i32
    %c0_i32_1 = arith.constant 0 : i32
    return %arg0, %c0_i32, %c0_i32_0 : i32, i32, i32
  }
  func.func @transform_3(%arg0: i32) -> (i32, i32, i32) {
    %c0_i32 = arith.constant 0 : i32
    %c0_i32_0 = arith.constant 0 : i32
    %c0_i32_1 = arith.constant 0 : i32
    return %arg0, %c0_i32, %c0_i32_0 : i32, i32, i32
  }
  func.func @transform_4(%arg0: i32) -> (i32, i32) {
    %c0_i32 = arith.constant 0 : i32
    %c0_i32_0 = arith.constant 0 : i32
    %c0_i32_1 = arith.constant 0 : i32
    return %c0_i32, %c0_i32_0 : i32, i32
  }
  func.func @transform_5(%arg0: i32) -> (i32, i32) {
    %c0_i32 = arith.constant 0 : i32
    %c0_i32_0 = arith.constant 0 : i32
    %c0_i32_1 = arith.constant 0 : i32
    return %c0_i32, %c0_i32_0 : i32, i32
  }
  func.func @transform_6(%arg0: i32) -> (i32, i32) {
    %c0_i32 = arith.constant 0 : i32
    %c0_i32_0 = arith.constant 0 : i32
    %c0_i32_1 = arith.constant 0 : i32
    return %c0_i32, %c0_i32_0 : i32, i32
  }
  func.func @transform_7(%arg0: i32) -> (i32, i32) {
    %c0_i32 = arith.constant 0 : i32
    %c0_i32_0 = arith.constant 0 : i32
    %c0_i32_1 = arith.constant 0 : i32
    return %c0_i32, %c0_i32_0 : i32, i32
  }
  func.func @transform_8(%arg0: i32) -> (i32, i32) {
    %c0_i32 = arith.constant 0 : i32
    %c0_i32_0 = arith.constant 0 : i32
    %c0_i32_1 = arith.constant 0 : i32
    return %c0_i32, %c0_i32_0 : i32, i32
  }
  func.func @transform_9(%arg0: i32) -> (i32, i32) {
    %c0_i32 = arith.constant 0 : i32
    %c0_i32_0 = arith.constant 0 : i32
    %c0_i32_1 = arith.constant 0 : i32
    return %c0_i32, %c0_i32_0 : i32, i32
  }
  func.func @transform_10(%arg0: i32) -> (i32, i32) {
    %c0_i32 = arith.constant 0 : i32
    %c0_i32_0 = arith.constant 0 : i32
    %c0_i32_1 = arith.constant 0 : i32
    return %c0_i32, %c0_i32_0 : i32, i32
  }
  func.func @transform_11(%arg0: i32) -> (i32, i32) {
    %c0_i32 = arith.constant 0 : i32
    %c0_i32_0 = arith.constant 0 : i32
    %c0_i32_1 = arith.constant 0 : i32
    return %c0_i32, %c0_i32_0 : i32, i32
  }
  func.func @transform_12(%arg0: i32) -> (i32, i32) {
    %c0_i32 = arith.constant 0 : i32
    %c0_i32_0 = arith.constant 0 : i32
    %c0_i32_1 = arith.constant 0 : i32
    return %c0_i32, %c0_i32_0 : i32, i32
  }
}

</mosaic_0001>

<bundles_post_ra>
// kernel: encoder_forward.3
= control target key start
LH: loop header
LB: loop body
LE: loop exit
PB: predicated region body
PF: predicated region fallthrough
CT: control target
= control target key end

     0   :  { %s1909_s17 = smov 0   ;;  %s2081_s0 = inlined_call_operand.vmem [shape: f32[2,16,32], index: 0, kind: input, shape index: {}]   ;;  %s2082_s1 = inlined_call_operand.vmem [shape: f32[2,16,64], index: 1, kind: input, shape index: {}]   ;;  %s2083_s2 = inlined_call_operand.vmem [shape: f32[2,4,16], index: 2, kind: input, shape index: {}]   ;;  %s2084_s3 = inlined_call_operand.vmem [shape: f32[2,4,16], index: 3, kind: input, shape index: {}]   ;;  %s2085_s4 = inlined_call_operand.vmem [shape: f32[12,4], index: 4, kind: input, shape index: {}]   ;;  %s2086_s5 = inlined_call_operand.vmem [shape: f32[12,4], index: 5, kind: input, shape index: {}]   ;;  %s2087_s6 = inlined_call_operand.vmem [shape: f32[64,16], index: 6, kind: input, shape index: {}]   ;;  %s2088_s7 = inlined_call_operand.vmem [shape: f32[128,64], index: 7, kind: input, shape index: {}]   ;;  %s2089_s8 = inlined_call_operand.vmem [shape: f32[1,64], index: 8, kind: input, shape index: {}]   ;;  %s2090_s9 = inlined_call_operand.vmem [shape: f32[8,64], index: 9, kind: input, shape index: {}]   ;;  %s2091_s10 = inlined_call_operand.vmem [shape: f32[2,64], index: 10, kind: input, shape index: {}]   ;;  %s2092_s11 = inlined_call_operand.vmem [shape: f32[2,12,3], index: 11, kind: output, shape index: {}]  }
   0x1 LB: > { %s1528_s18 = sadd.s32 4294967295, %s1840_s17   ;;  %p1532_p0 = scmp.ge.s32.totalorder %s1840_s17, 1  ;;  %s1840_s17 = sphi %s1909_s17, %s21_s17  }
   0x2   : > { %p365_p1 = scmp.lt.s32.totalorder %s1840_s17, 3 }
   0x4   : > { %p366_p2 = pnand %p1532_p0, %p365_p1 }
   0x5   : > { %p418_p3 = scmp.lt.s32.totalorder (!%p366_p2), %s1528_s18, 1  ;;  %v1842_v0 = vmov (!%p366_p2), 0.0|0.0   ;;  %vm1843_vm0 = vmmov (!%p366_p2), 0   ;;  %v1844_v1 = vmov (!%p366_p2), 0.0   ;;  %vm476_vm1 = vcmask (!%p366_p2), 125952   ;;  %v447_v15 = vld [vmem:[%s2085_s4] sm:$0xff] (!%p366_p2) }
   0x6   : > { %369 = sbr.rel (%p366_p2) target bundleno = 1774 (0x6ee), region = 64  ;;  %1732 = vmatprep.subr.bf16.mxu0 (!%p366_p2), %v1842_v0  ;;  %1631 = vmatprep.mubr.msk.f32.mxu0 (!%p366_p2), %vm1843_vm0, %v1844_v1  ;;  %vm484_vm2 = vcmask (!%p366_p2), 130048   ;;  %vm638_vm3 = vcmask (!%p366_p2), 31744   ;;  %v449_v16 = vld [vmem:[%s2086_s5] sm:$0xff] (!%p366_p2)  ;;  %v452_v21 = vld [vmem:[%s2087_s6 + $0x8] sm:$0xff] (!%p366_p2)  ;;  %vm645_vm4 = vcmask (!%p366_p2), 1043456  }
   0x7   : > { %1648 = vmatprep.mubr.msk.f32.mxu1 (!%p366_p2), %vm638_vm3, %v449_v16  ;;  %v451_v20 = vld [vmem:[%s2087_s6] sm:$0xff] (!%p366_p2)  ;;  %v453_v22 = vld [vmem:[%s2087_s6 + $0x10] sm:$0xff] (!%p366_p2)  ;;  %v454_v23 = vld [vmem:[%s2087_s6 + $0x18] sm:$0xff] (!%p366_p2)  ;;  %vm807_vm6 = vcmask (!%p366_p2), 523264   ;;  %s1846_s22 = smov (!%p366_p2), 32   ;;  %vm1159_vm7 = vcmask (!%p366_p2), 261120  }
   0x8   : > { %v448_v25 = vld [vmem:[%s2085_s4 + $0x8] sm:$0xf] (!%p366_p2)  ;;  %v1738_v27 = vpack.c.bf16 (!%p366_p2), %v452_v21, %v451_v20  ;;  %v1742_v29 = vpack.c.bf16 (!%p366_p2), %v454_v23, %v453_v22  ;;  %v455_v30 = vld [vmem:[%s2087_s6 + $0x20] sm:$0xff] (!%p366_p2)  ;;  %v457_v37 = vld [vmem:[%s2087_s6 + $0x30] sm:$0xff] (!%p366_p2)  ;;  %vm1164_vm8 = vcmask (!%p366_p2), 785408   ;;  %vm1418_vm9 = vcmask (!%p366_p2), 60416  }
   0x9   : > { %v450_v26 = vld [vmem:[%s2086_s5 + $0x8] sm:$0xf] (!%p366_p2)  ;;  %v458_v38 = vld [vmem:[%s2087_s6 + $0x38] sm:$0xff] (!%p366_p2)  ;;  %v471_v20 = vld [vmem:[%s2088_s7 + $0x60] sm:$0xff] (!%p366_p2)  ;;  %vm1414_vm10 = vcmask (!%p366_p2), 64512   ;;  %s1848_s30 = smov (!%p366_p2), 1  }
   0xa   : > { %v456_v31 = vld [vmem:[%s2087_s6 + $0x28] sm:$0xff] (!%p366_p2)  ;;  %v1750_v39 = vpack.c.bf16 (!%p366_p2), %v458_v38, %v457_v37  ;;  %v473_v23 = vld [vmem:[%s2088_s7 + $0x70] sm:$0xff] (!%p366_p2)  ;;  %vm1430_vm11 = vcmask (!%p366_p2), 7168   ;;  %vm1433_vm12 = vcmask (!%p366_p2), 23552   ;;  %vm1435_vm13 = vcmask (!%p366_p2), 19456  }
   0xb   : > { %v1746_v33 = vpack.c.bf16 (!%p366_p2), %v456_v31, %v455_v30  ;;  %v472_v21 = vld [vmem:[%s2088_s7 + $0x68] sm:$0xff] (!%p366_p2) }
   0xc   : > { %v1782_v22 = vpack.c.bf16 (!%p366_p2), %v472_v21, %v471_v20 }
   0xd   : > { %s2094_s18 = smov (!%p418_p3, %s1528_s18), 1 }
   0xe   : > { %s1918_s19 = sshll.u32 %s2094_s18, 4  ;;  %s1537_s20 = sshll.u32 %s2094_s18, 2 }
   0xf   : > { %s422_s23 = scalar_lea.vmem %s2081_s0, %s1918_s19  ;;  %s431_s26 = scalar_lea.vmem %s2083_s2, %s1537_s20 }
  0x10   : > { %v1927_v2 = vld [vmem:[%s422_s23] sm:$0xff]  ;;  %v1929_v3 = vld [vmem:[%s422_s23 + $0x8] sm:$0xff]  ;;  %s427_s29 = scalar_lea.vmem %s2082_s1, %s1918_s19  ;;  %s435_s13 = scalar_lea.vmem %s2084_s3, %s1537_s20 }
  0x11   : > { %v480_v4 = vmul.f32 1.442695, %v1927_v2  ;;  %v482_v5 = vmul.f32 1.442695, %v1929_v3  ;;  %v445_v6 = vld [vmem:[%s431_s26] sm:$0xf]  ;;  %v1754_v52 = vpack.c.bf16 %v1929_v3, %v1927_v2  ;;  %s440_s14 = scalar_lea.vmem %s2092_s11, %s1918_s19 }
  0x12   : > { %v477_v7 = vsel %vm476_vm1, %v445_v6, 0.0  ;;  %v443_v10 = vld [vmem:[%s427_s29] sm:$0xff]  ;;  %v444_v11 = vld [vmem:[%s427_s29 + $0x8] sm:$0xff]  ;;  %s1845_s23 = smov 64  }
  0x13   : > { %1820 = vpow2.f32 %v480_v4  ;;  %478 = vadd.xlane.f32.xlu1 %v477_v7  ;;  %v1736_v13 = vpack.c.bf16 %v444_v11, %v443_v10  ;;  %v446_v14 = vld [vmem:[%s435_s13] sm:$0xf]  ;;  %v460_v3 = vld [vmem:[%s2088_s7 + $0x8] sm:$0xff]  ;;  %v461_v4 = vld [vmem:[%s2088_s7 + $0x10] sm:$0xff] }
  0x14   : > { %1822 = vpow2.f32 %v482_v5  ;;  %v459_v2 = vld [vmem:[%s2088_s7] sm:$0xff]  ;;  %v465_v11 = vld [vmem:[%s2088_s7 + $0x30] sm:$0xff] }
  0x15   : > { %v1758_v5 = vpack.c.bf16 %v460_v3, %v459_v2 }
  0x1d   : > { %v1821_v8 = vpop.eup %1820 }
  0x1e   : > { %v1823_v9 = vpop.eup %1822 }
  0x1f   : > { %v1733_v12 = vpack.c.bf16 %v1823_v9, %v1821_v8  ;;  %v463_v8 = vld [vmem:[%s2088_s7 + $0x20] sm:$0xff]  ;;  %v464_v9 = vld [vmem:[%s2088_s7 + $0x28] sm:$0xff] }
  0x20   : > { %v1766_v10 = vpack.c.bf16 %v464_v9, %v463_v8 }
  0x21   : > { %1734 = vmatpush3.bf16.msra.mxu0 %v1733_v12  ;;  %v466_v12 = vld [vmem:[%s2088_s7 + $0x38] sm:$0xff] }
  0x22   : > { %1735 = vmatprep.subr.bf16.mxu0 %v1842_v0 }
  0x24   : > { %1632 = vmatmul.mubr.msk.f32.vlgmr.msra.gmra.mrb[0].mxu0 %vm484_vm2, %v445_v6  ;;  %v462_v6 = vld [vmem:[%s2088_s7 + $0x18] sm:$0xff] }
  0x25   : > { %1737 = vmatpush3.bf16.msra.mxu0 %v1736_v13  ;;  %1638 = vmatprep.mubr.msk.f32.mxu0 %vm1843_vm0, %v1844_v1  ;;  %v1762_v7 = vpack.c.bf16 %v462_v6, %v461_v4  ;;  %v1770_v13 = vpack.c.bf16 %v466_v12, %v465_v11 }
  0x28   : > { %1639 = vmatmul.mubr.msk.f32.vlgmr.msra.gmra.mrb[2].mxu0 %vm484_vm2, %v446_v14  ;;  %v467_v14 = vld [vmem:[%s2088_s7 + $0x40] sm:$0xff] }
  0x29   : > { %1643 = vmatprep.mubr.msk.f32.mxu0 %vm638_vm3, %v447_v15 }
  0xa0   : > { %v479_v32 = vpop.xlane.xlu1 %478 }
  0xa1   : > { %vm561_vm5 = vcmp.gt.f32.partialorder %v479_v32, 0.0 }
  0xf7   : > { %v554_v17 = vpop.f32.mrb[0].mxu0 }
  0xf8   : > { %v558_v18 = vmax.f32 %v554_v17, 1e-30  ;;  %v1633_v19 = vpop.f32.mrb[1].mxu0  ;;  %v469_v17 = vld [vmem:[%s2088_s7 + $0x50] sm:$0xff] }
  0xfa   : > { %1824 = vlog2.f32 %v558_v18  ;;  %v470_v18 = vld [vmem:[%s2088_s7 + $0x58] sm:$0xff] }
  0xfb   : > { %v634_v24 = vpop.f32.mrb[2].mxu0  ;;  %v1778_v19 = vpack.c.bf16 %v470_v18, %v469_v17 }
  0xfc   : > { %v1640_v28 = vpop.f32.mrb[3].mxu0  ;;  %1641 = vmatprep.subr.msk.mxu0 %vm645_vm4, %v634_v24  ;;  %1646 = vmatprep.subr.msk.mxu1 %vm645_vm4, %v634_v24 }
  0xfd   : > { %1642 = vmatpush3.msk.msra.mxu0 %vm645_vm4, %v634_v24  ;;  %1647 = vmatpush3.msk.msra.mxu1 %vm645_vm4, %v634_v24  ;;  %v474_v24 = vld [vmem:[%s2088_s7 + $0x78] sm:$0xff] }
  0xfe   : > { %1644 = vmatmul.mubr.msk.f32.vlgmr.msra.gmra.mrb[4].mxu0 %vm638_vm3, %v448_v25  ;;  %1649 = vmatmul.mubr.msk.f32.vlgmr.msra.gmra.mrb[0].mxu1 %vm638_vm3, %v450_v26 }
  0xff   : > { %1679 = vmatprep.mubr.msk.f32.mxu1 %vm638_vm3, %v447_v15  ;;  %1739 = vmatprep.subr.bf16.mxu0 %v1738_v27  ;;  %v468_v15 = vld [vmem:[%s2088_s7 + $0x48] sm:$0xff] }
 0x100   : > { %1741 = vmatpush3.bf16.msra.mxu0 %v1738_v27 }
 0x101   : > { %1743 = vmatprep.subr.bf16.mxu0 %v1742_v29 }
 0x104   : > { %v1825_v34 = vpop.eup %1824  ;;  %1745 = vmatpush3.bf16.msra.mxu0 %v1742_v29 }
 0x105   : > { %v560_v35 = vmul.f32 0.6931472, %v1825_v34  ;;  %1747 = vmatprep.subr.bf16.mxu0 %v1746_v33 }
 0x107   : > { %v564_v36 = vsel %vm561_vm5, %v560_v35, 0.0 }
 0x108   : > { %1677 = vmatprep.subr.msk.mxu1 %vm645_vm4, %v564_v36  ;;  %1749 = vmatpush3.bf16.msra.mxu0 %v1746_v33 }
 0x109   : > { %1678 = vmatpush3.msk.msra.mxu1 %vm645_vm4, %v564_v36  ;;  %1751 = vmatprep.subr.bf16.mxu0 %v1750_v39 }
 0x10a   : > { %1682 = vmatprep.subr.msk.mxu1 %vm645_vm4, %v564_v36  ;;  %1680 = vmatmul.mubr.msk.f32.vlgmr.msra.gmra.mrb[2].mxu1 %vm638_vm3, %v448_v25  ;;  %v1786_v25 = vpack.c.bf16 %v474_v24, %v473_v23 }
 0x10b   : > { %1683 = vmatpush3.msk.msra.mxu1 %vm645_vm4, %v564_v36  ;;  %1684 = vmatprep.mubr.msk.f32.mxu1 %vm638_vm3, %v449_v16  ;;  %v1774_v16 = vpack.c.bf16 %v468_v15, %v467_v14 }
 0x10c   : > { %1753 = vmatpush3.bf16.msra.mxu0 %v1750_v39  ;;  %1759 = vmatprep.subr.bf16.mxu1 %v1758_v5 }
 0x10d   : > { %1755 = vmatprep.subr.bf16.mxu0 %v1754_v52 }
 0x10e   : > { %1685 = vmatmul.mubr.msk.f32.vlgmr.msra.gmra.mrb[4].mxu1 %vm638_vm3, %v450_v26 }
 0x10f   : > { %1761 = vmatpush3.bf16.msra.mxu1 %v1758_v5 }
 0x110   : > { %1763 = vmatprep.subr.bf16.mxu1 %v1762_v7 }
 0x113   : > { %1765 = vmatpush3.bf16.msra.mxu1 %v1762_v7 }
 0x114   : > { %1767 = vmatprep.subr.bf16.mxu1 %v1766_v10 }
 0x117   : > { %1769 = vmatpush3.bf16.msra.mxu1 %v1766_v10 }
 0x118   : > { %1771 = vmatprep.subr.bf16.mxu1 %v1770_v13 }
 0x11b   : > { %1773 = vmatpush3.bf16.msra.mxu1 %v1770_v13 }
 0x11c   : > { %1775 = vmatprep.subr.bf16.mxu1 %v1774_v16 }
 0x11f   : > { %1777 = vmatpush3.bf16.msra.mxu1 %v1774_v16 }
 0x120   : > { %1779 = vmatprep.subr.bf16.mxu1 %v1778_v19 }
 0x123   : > { %1781 = vmatpush3.bf16.msra.mxu1 %v1778_v19 }
 0x124   : > { %1783 = vmatprep.subr.bf16.mxu1 %v1782_v22 }
 0x127   : > { %1785 = vmatpush3.bf16.msra.mxu1 %v1782_v22 }
 0x128   : > { %1787 = vmatprep.subr.bf16.mxu1 %v1786_v25 }
 0x12b   : > { %1789 = vmatpush3.bf16.msra.mxu1 %v1786_v25 }
 0x1d1   : > { %v1645_v40 = vpop.f32.mrb[4].mxu0  ;;  %v1650_v41 = vpop.f32.mrb[0].mxu1 }
 0x1d2   : > { %v806_v42 = vmul.f32 %v1650_v41, %v1645_v40  ;;  %v715_v43 = vpop.f32.mrb[5].mxu0  ;;  %v796_v44 = vpop.f32.mrb[1].mxu1 }
 0x1d3   : > { %v805_v45 = vmul.f32 %v796_v44, %v715_v43  ;;  %v1250_v44 = vld [vmem:[%s2090_s9] sm:$0xff] }
 0x1d5   : > { %1667 = vmatprep.mubr.msk.f32.mxu0 %vm807_vm6, %v805_v45  ;;  %v1335_v45 = vld [vmem:[%s2091_s10] sm:$0x3] }
 0x1d6   : > { %1668 = vmatmul.mubr.msk.f32.vlgmr.msra.gmra.mrb[6].mxu0 %vm807_vm6, %v806_v42 }
 0x1d7   : > { %1757 = vmatpush3.bf16.msra.mxu0 %v1754_v52 }
 0x1d8   : > { %1722 = vmatprep.subr.msk.mxu0 %vm807_vm6, %v1250_v44 }
 0x1dd   : > { %v2002_v53 = vpop.f32.mrb[2].mxu1 }
 0x1de   : > { %v1053_v62 = vpop.f32.mrb[3].mxu1 }
 0x1e1   : > { %v1686_v63 = vpop.f32.mrb[4].mxu1 }
 0x1e2   : > { %v1128_v0 = vpop.f32.mrb[5].mxu1 }
 0x1e3   : > { %v1805_v1 = vpack.i.bf16 %v1686_v63, %v1128_v0 }
 0x2a9   : > { %v1669_v46 = vpop.f32.mrb[6].mxu0 }
 0x2aa   : > { %v880_v47 = vpop.f32.mrb[7].mxu0  ;;  %v890_v49 = vand.u32 2147483647, %v1669_v46 }
 0x2ab   : > { %v889_v48 = vand.u32 2147483647, %v880_v47 }
 0x2ac   : > { %v894_v51 = vsel %vm476_vm1, %v890_v49, 0.0 }
 0x2ad   : > { %v891_v50 = vsel %vm484_vm2, %v889_v48, 0.0 }
 0x2ae   : > { %892 = vadd.xlane.f32.xlu0 %v891_v50 }
 0x2b2   : > { %895 = vadd.xlane.f32.xlu0 %v894_v51 }
 0x2c8   : > { %1806 = vrot.lane.b32.xlu0 %v1805_v1, %s1845_s23  ;;  %s1847_s23 = smov 96  }
 0x33b   : > { %v893_v54 = vpop.xlane.xlu0 %892 }
 0x33c   : > { %v897_v55 = vmax.f32 %v893_v54, 1e-12 }
 0x33e   : > { %1826 = vrcp.f32 %v897_v55 }
 0x33f   : > { %v896_v56 = vpop.xlane.xlu0 %895 }
 0x340   : > { %v898_v57 = vmax.f32 %v896_v56, 1e-12 }
 0x342   : > { %1828 = vrcp.f32 %v898_v57 }
 0x343   : > { %v1807_v29 = vpop.permute.xlu0 %1806 }
 0x344   : > { %v1809_v33 = vunpack.i.h.bf16 %v1807_v29  ;;  %v1808_v34 = vunpack.i.l.bf16 %v1807_v29 }
 0x348   : > { %v1827_v58 = vpop.eup %1826 }
 0x349   : > { %v900_v59 = vmul.f32 %v1827_v58, %v880_v47 }
 0x34b   : > { %1674 = vmatprep.mubr.msk.f32.mxu0 %vm484_vm2, %v900_v59 }
 0x34c   : > { %v1829_v60 = vpop.eup %1828 }
 0x34d   : > { %v902_v61 = vmul.f32 %v1829_v60, %v1669_v46  ;;  %v1559_v46 = vld [vmem:[%s2089_s8] ss:$0 sm:$0xff] }
 0x34f   : > { %1675 = vmatmul.mubr.msk.f32.vlgmr.msra.gmra.mrb[8].mxu0 %vm484_vm2, %v902_v61 }
 0x350   : > { %1723 = vmatpush3.xpose.msk.msra.mxu0 %vm807_vm6, %v1250_v44 }
 0x351   : > { %1727 = vmatprep.subr.msk.mxu0 %vm807_vm6, %v1335_v45 }
 0x422   : > { %v1676_v26 = vpop.f32.mrb[8].mxu0 }
 0x423   : > { %v975_v27 = vpop.f32.mrb[9].mxu0 }
 0x424   : > { %v1815_v28 = vpack.i.bf16 %v1676_v26, %v975_v27 }
 0x426   : > { %1811 = vrot.lane.b32.xlu1 %v1815_v28, %s1846_s22 }
 0x42a   : > { %1816 = vrot.lane.b32.xlu1 %v1815_v28, %s1847_s23 }
 0x498   : > { %v1812_v30 = vpop.permute.xlu1 %1811 }
 0x499   : > { %v1814_v31 = vunpack.i.h.bf16 %v1812_v30  ;;  %v1813_v32 = vunpack.i.l.bf16 %v1812_v30 }
 0x49b   : > { %v1161_v35 = vsel %vm1159_vm7, %v2002_v53, %v1814_v31  ;;  %v1160_v36 = vsel %vm1159_vm7, %v1053_v62, %v1813_v32 }
 0x49c   : > { %v1817_v37 = vpop.permute.xlu1 %1816  ;;  %v1162_v40 = vsel %vm807_vm6, %v1160_v36, %v1808_v34  ;;  %v1163_v41 = vsel %vm807_vm6, %v1161_v35, %v1809_v33 }
 0x49d   : > { %v1819_v38 = vunpack.i.h.bf16 %v1817_v37  ;;  %v1818_v39 = vunpack.i.l.bf16 %v1817_v37 }
 0x49f   : > { %v1165_v42 = vsel %vm1164_vm8, %v1162_v40, %v1818_v39  ;;  %v1166_v43 = vsel %vm1164_vm8, %v1163_v41, %v1819_v38 }
 0x4a0   : > { %1719 = vmatprep.mubr.f32.mxu1 %v1165_v42 }
 0x4a1   : > { %1720 = vmatmul.mubr.f32.vlgmr.msra.gmra.mrb[6].mxu1 %v1166_v43 }
 0x574   : > { %v1721_v47 = vpop.f32.mrb[6].mxu1 }
 0x575   : > { %v1245_v48 = vadd.f32 %v1721_v47, %v1559_v46  ;;  %v1239_v49 = vpop.f32.mrb[7].mxu1 }
 0x576   : > { %v1240_v50 = vadd.f32 %v1559_v46, %v1239_v49 }
 0x578   : > { %1830 = vtanh.f32 %v1240_v50 }
 0x579   : > { %1832 = vtanh.f32 %v1245_v48 }
 0x582   : > { %v1831_v51 = vpop.eup %1830 }
 0x583   : > { %v1833_v52 = vpop.eup %1832  ;;  %1724 = vmatprep.mubr.msk.f32.mxu0 %vm807_vm6, %v1831_v51 }
 0x584   : > { %1725 = vmatmul.mubr.msk.f32.vlgmr.msra.gmra.mrb[10].mxu0 %vm807_vm6, %v1833_v52 }
 0x585   : > { %1728 = vmatpush3.xpose.msk.msra.mxu0 %vm807_vm6, %v1335_v45  ;;  %1729 = vmatprep.mubr.msk.f32.mxu0 %vm807_vm6, %v1831_v51 }
 0x588   : > { %1730 = vmatmul.mubr.msk.f32.vlgmr.msra.gmra.mrb[12].mxu0 %vm807_vm6, %v1833_v52 }
 0x657   : > { %v1726_v53 = vpop.f32.mrb[10].mxu0 }
 0x658   : > { %v1326_v54 = vpop.f32.mrb[11].mxu0  ;;  %v1419_v55 = vsel %vm1418_vm9, %v1726_v53, -inf }
 0x659   : > { %1420 = vmax.xlane.f32.xlu0 %v1419_v55  ;;  %v1415_v56 = vsel %vm1414_vm10, %v1326_v54, -inf }
 0x65a   : > { %1416 = vmax.xlane.f32.xlu1 %v1415_v56 }
 0x65b   : > { %v1731_v57 = vpop.f32.mrb[12].mxu0 }
 0x65c   : > { %v1405_v58 = vpop.f32.mrb[13].mxu0 }
 0x66b   : > { %1426 = vrot.lane.b32.xlu1 %v1731_v57, %s1848_s30 }
 0x66f   : > { %1424 = vrot.lane.b32.xlu0 %v1405_v58, %s1848_s30 }
 0x6e6   : > { %v1421_v59 = vpop.xlane.xlu0 %1420 }
 0x6e7   : > { %v1417_v60 = vpop.xlane.xlu1 %1416 }
 0x6ea   : > { %v1425_v61 = vpop.permute.xlu0 %1424 }
 0x6eb   : > { %v1431_v62 = vsel %vm1430_vm11, %v1417_v60, %v1425_v61  ;;  %v1427_v63 = vpop.permute.xlu1 %1426 }
 0x6ec   : > { %1434 = vst.msk [vmem:[%s440_s14] sm:$0xff] %vm1433_vm12, %v1431_v62  ;;  %v1432_v0 = vsel %vm1430_vm11, %v1421_v59, %v1427_v63 }
 0x6ed   : > { %1436 = vst.msk [vmem:[%s440_s14 + $0x8] sm:$0xf] %vm1435_vm13, %v1432_v0 }
 0x6ee PF: > { %s21_s17 = sadd.s32 1, %s1840_s17  }
 0x6ef   : > { %p18_p4 = scmp.ge.s32.totalorder %s21_s17, 4  }
 0x6f1   :  { %20 = sbr.rel (!%p18_p4) target bundleno = 1 (0x1), region = 103 }

// kernel: encoder_forward.2
= control target key start
LH: loop header
LB: loop body
LE: loop exit
PB: predicated region body
PF: predicated region fallthrough
CT: control target
= control target key end

     0   :  { %s1885_s21 = smov 0   ;;  %s2081_s0 = inlined_call_operand.vmem [shape: f32[2,16,32], index: 0, kind: input, shape index: {}]   ;;  %s2082_s1 = inlined_call_operand.vmem [shape: f32[2,16,64], index: 1, kind: input, shape index: {}]   ;;  %s2083_s2 = inlined_call_operand.vmem [shape: f32[2,4,16], index: 2, kind: input, shape index: {}]   ;;  %s2084_s3 = inlined_call_operand.vmem [shape: f32[2,4,16], index: 3, kind: input, shape index: {}]   ;;  %s2085_s4 = inlined_call_operand.vmem [shape: f32[8,4], index: 4, kind: input, shape index: {}]   ;;  %s2086_s5 = inlined_call_operand.vmem [shape: f32[8,4], index: 5, kind: input, shape index: {}]   ;;  %s2087_s6 = inlined_call_operand.vmem [shape: f32[2,8], index: 6, kind: input, shape index: {}]   ;;  %s2088_s7 = inlined_call_operand.vmem [shape: f32[64,16], index: 7, kind: input, shape index: {}]   ;;  %s2089_s8 = inlined_call_operand.vmem [shape: f32[128,64], index: 8, kind: input, shape index: {}]   ;;  %s2090_s9 = inlined_call_operand.vmem [shape: f32[1,64], index: 9, kind: input, shape index: {}]   ;;  %s2091_s10 = inlined_call_operand.vmem [shape: f32[8,64], index: 10, kind: input, shape index: {}]   ;;  %s2092_s11 = inlined_call_operand.vmem [shape: f32[2,64], index: 11, kind: output, shape index: {0}]   ;;  %s2093_s12 = inlined_call_operand.vmem [shape: f32[8,64], index: 12, kind: output, shape index: {1}]  }
   0x1 LB: > { %s1891_s22 = sadd.s32 4294967295, %s1809_s21   ;;  %p1536_p0 = scmp.ge.s32.totalorder %s1809_s21, 1  ;;  %s1809_s21 = sphi %s1885_s21, %s23_s21  }
   0x2   : > { %p383_p1 = scmp.lt.s32.totalorder %s1809_s21, 3 }
   0x4   : > { %p384_p2 = pnand %p1536_p0, %p383_p1 }
   0x5   : > { %p433_p3 = scmp.lt.s32.totalorder (!%p384_p2), %s1891_s22, 1  ;;  %v1811_v0 = vmov (!%p384_p2), 0.0|0.0   ;;  %vm1812_vm0 = vmmov (!%p384_p2), 0   ;;  %v1813_v1 = vmov (!%p384_p2), 0.0   ;;  %vm492_vm1 = vcmask (!%p384_p2), 130048   ;;  %v1932_v16 = vld [vmem:[%s2085_s4] sm:$0xff] (!%p384_p2) }
   0x6   : > { %387 = sbr.rel (%p384_p2) target bundleno = 2384 (0x950), region = 64  ;;  %1726 = vmatprep.subr.bf16.mxu0 (!%p384_p2), %v1811_v0  ;;  %1620 = vmatprep.mubr.msk.f32.mxu0 (!%p384_p2), %vm1812_vm0, %v1813_v1  ;;  %vm650_vm2 = vcmask (!%p384_p2), 1043456   ;;  %vm646_vm3 = vcmask (!%p384_p2), 31744   ;;  %v459_v18 = vld [vmem:[%s2088_s7] sm:$0xff] (!%p384_p2)  ;;  %v460_v19 = vld [vmem:[%s2088_s7 + $0x8] sm:$0xff] (!%p384_p2)  ;;  %v461_v23 = vld [vmem:[%s2088_s7 + $0x10] sm:$0xff] (!%p384_p2) }
   0x7   : > { %1666 = vmatprep.subr.mxu1 (!%p384_p2), %v1813_v1  ;;  %1668 = vmatprep.mubr.msk.f32.mxu1 (!%p384_p2), %vm1812_vm0, %v1813_v1  ;;  %v458_v21 = vld [vmem:[%s2086_s5] sm:$0xff] (!%p384_p2)  ;;  %v1733_v22 = vpack.c.bf16 (!%p384_p2), %v460_v19, %v459_v18  ;;  %v462_v24 = vld [vmem:[%s2088_s7 + $0x18] sm:$0xff] (!%p384_p2)  ;;  %v464_v27 = vld [vmem:[%s2088_s7 + $0x28] sm:$0xff] (!%p384_p2)  ;;  %vm798_vm4 = vcmask (!%p384_p2), 523264   ;;  %vm484_vm5 = vcmask (!%p384_p2), 125952   ;;  %s1814_s26 = smov (!%p384_p2), 96  }
   0x8   : > { %v1736_v25 = vpack.c.bf16 (!%p384_p2), %v462_v24, %v461_v23  ;;  %v463_v26 = vld [vmem:[%s2088_s7 + $0x20] sm:$0xff] (!%p384_p2)  ;;  %v465_v29 = vld [vmem:[%s2088_s7 + $0x30] sm:$0xff] (!%p384_p2)  ;;  %v466_v30 = vld [vmem:[%s2088_s7 + $0x38] sm:$0xff] (!%p384_p2)  ;;  %vm1106_vm7 = vcmask (!%p384_p2), 261120   ;;  %vm1109_vm8 = vcmask (!%p384_p2), 785408   ;;  %p1556_p4 = scmp.ne.s32.totalorder (!%p384_p2), %s1891_s22, 0 }
   0x9   : > { %v1739_v28 = vpack.c.bf16 (!%p384_p2), %v464_v27, %v463_v26  ;;  %v1742_v31 = vpack.c.bf16 (!%p384_p2), %v466_v30, %v465_v29  ;;  %v467_v52 = vld [vmem:[%s2089_s8] sm:$0xff] (!%p384_p2)  ;;  %v468_v53 = vld [vmem:[%s2089_s8 + $0x8] sm:$0xff] (!%p384_p2)  ;;  %v469_v54 = vld [vmem:[%s2089_s8 + $0x10] sm:$0xff] (!%p384_p2) }
   0xa   : > { %v1748_v55 = vpack.c.bf16 (!%p384_p2), %v468_v53, %v467_v52  ;;  %v470_v56 = vld [vmem:[%s2089_s8 + $0x18] sm:$0xff] (!%p384_p2)  ;;  %v471_v58 = vld [vmem:[%s2089_s8 + $0x20] sm:$0xff] (!%p384_p2)  ;;  %v472_v59 = vld [vmem:[%s2089_s8 + $0x28] sm:$0xff] (!%p384_p2) }
   0xb   : > { %v1751_v57 = vpack.c.bf16 (!%p384_p2), %v470_v56, %v469_v54  ;;  %v1754_v60 = vpack.c.bf16 (!%p384_p2), %v472_v59, %v471_v58  ;;  %v473_v61 = vld [vmem:[%s2089_s8 + $0x30] sm:$0xff] (!%p384_p2)  ;;  %v474_v62 = vld [vmem:[%s2089_s8 + $0x38] sm:$0xff] (!%p384_p2) }
   0xc   : > { %v1757_v63 = vpack.c.bf16 (!%p384_p2), %v474_v62, %v473_v61 }
   0xd   : > { %s434_s23 = scalar_select %p433_p3, %s1891_s22, 1 }
   0xe   : > { %vm1192_vm9 = vcmask (!%p1556_p4), 517120   ;;  %v1817_v30 = vmov (!%p1556_p4), 0.0  }
   0xf   : > { %s1565_s24 = sshll.u32 %s434_s23, 4  ;;  %s1541_s28 = sshll.u32 %s434_s23, 2  ;;  %1193 = vst.msk [vmem:[#allocation2] sm:$0x3] (!%p1556_p4), %vm1192_vm9, %v1817_v30 }
  0x10   : > { %s437_s27 = scalar_lea.vmem %s2081_s0, %s1565_s24  ;;  %s442_s13 = scalar_lea.vmem %s2082_s1, %s1565_s24 }
  0x11   : > { %v1906_v2 = vld [vmem:[%s437_s27] sm:$0xff]  ;;  %v1908_v3 = vld [vmem:[%s437_s27 + $0x8] sm:$0xff]  ;;  %s446_s16 = scalar_lea.vmem %s2083_s2, %s1541_s28  ;;  %s450_s19 = scalar_lea.vmem %s2084_s3, %s1541_s28 }
  0x12   : > { %v488_v4 = vmul.f32 1.442695, %v1906_v2  ;;  %v490_v5 = vmul.f32 1.442695, %v1908_v3  ;;  %v453_v8 = vld [vmem:[%s442_s13] sm:$0xff]  ;;  %v454_v9 = vld [vmem:[%s442_s13 + $0x8] sm:$0xff]  ;;  %v1745_v42 = vpack.c.bf16 %v1908_v3, %v1906_v2 }
  0x13   : > { %v455_v11 = vld [vmem:[%s446_s16] sm:$0xf]  ;;  %v1730_v12 = vpack.c.bf16 %v454_v9, %v453_v8  ;;  %v476_v3 = vld [vmem:[%s2089_s8 + $0x48] sm:$0xff]  ;;  %s1815_s27 = smov 32   ;;  %s1816_s28 = smov 64  }
  0x14   : > { %1788 = vpow2.f32 %v488_v4  ;;  %v456_v13 = vld [vmem:[%s450_s19] sm:$0xf]  ;;  %v485_v41 = vsel %vm484_vm5, %v455_v11, 0.0  ;;  %v480_v9 = vld [vmem:[%s2089_s8 + $0x68] sm:$0xff] }
  0x15   : > { %1790 = vpow2.f32 %v490_v5  ;;  %v475_v2 = vld [vmem:[%s2089_s8 + $0x40] sm:$0xff]  ;;  %v477_v5 = vld [vmem:[%s2089_s8 + $0x50] sm:$0xff] }
  0x16   : > { %v1760_v4 = vpack.c.bf16 %v476_v3, %v475_v2  ;;  %v479_v8 = vld [vmem:[%s2089_s8 + $0x60] sm:$0xff] }
  0x1e   : > { %v1789_v6 = vpop.eup %1788 }
  0x1f   : > { %v1791_v7 = vpop.eup %1790 }
  0x20   : > { %v1727_v10 = vpack.c.bf16 %v1791_v7, %v1789_v6  ;;  %v478_v6 = vld [vmem:[%s2089_s8 + $0x58] sm:$0xff] }
  0x21   : > { %v1763_v7 = vpack.c.bf16 %v478_v6, %v477_v5 }
  0x22   : > { %1728 = vmatpush3.bf16.msra.mxu0 %v1727_v10  ;;  %v1766_v10 = vpack.c.bf16 %v480_v9, %v479_v8 }
  0x23   : > { %1729 = vmatprep.subr.bf16.mxu0 %v1811_v0 }
  0x25   : > { %1621 = vmatmul.mubr.msk.f32.vlgmr.msra.gmra.mrb[0].mxu0 %vm492_vm1, %v455_v11  ;;  %v481_v11 = vld [vmem:[%s2089_s8 + $0x70] sm:$0xff] }
  0x26   : > { %1731 = vmatpush3.bf16.msra.mxu0 %v1730_v12  ;;  %1627 = vmatprep.mubr.msk.f32.mxu0 %vm1812_vm0, %v1813_v1  ;;  %v482_v12 = vld [vmem:[%s2089_s8 + $0x78] sm:$0xff] }
  0x27   : > { %1630 = vmatprep.subr.mxu0 %v1813_v1 }
  0x29   : > { %1628 = vmatmul.mubr.msk.f32.vlgmr.msra.gmra.mrb[2].mxu0 %vm492_vm1, %v456_v13  ;;  %v1769_v13 = vpack.c.bf16 %v482_v12, %v481_v11 }
  0x2a   : > { %1632 = vmatprep.mubr.msk.f32.mxu0 %vm1812_vm0, %v1813_v1 }
  0xf8   : > { %v562_v14 = vpop.f32.mrb[0].mxu0 }
  0xf9   : > { %v1622_v15 = vpop.f32.mrb[1].mxu0  ;;  %v566_v43 = vmax.f32 %v562_v14, 1e-30 }
  0xfb   : > { %1792 = vlog2.f32 %v566_v43 }
  0xfc   : > { %v642_v17 = vpop.f32.mrb[2].mxu0 }
  0xfd   : > { %v1629_v20 = vpop.f32.mrb[3].mxu0  ;;  %1631 = vmatpush3.msk.msra.mxu0 %vm650_vm2, %v642_v17 }
  0xfe   : > { %1633 = vmatmul.mubr.msk.f32.vlgmr.msra.gmra.mrb[4].mxu0 %vm646_vm3, %v1932_v16  ;;  %1635 = vmatprep.subr.mxu0 %v1813_v1 }
  0xff   : > { %1636 = vmatpush3.msk.msra.mxu0 %vm650_vm2, %v642_v17  ;;  %1637 = vmatprep.mubr.msk.f32.mxu0 %vm1812_vm0, %v1813_v1 }
 0x100   : > { %1732 = vmatprep.subr.bf16.mxu0 %v1811_v0 }
 0x102   : > { %1638 = vmatmul.mubr.msk.f32.vlgmr.msra.gmra.mrb[6].mxu0 %vm646_vm3, %v458_v21 }
 0x103   : > { %1734 = vmatpush3.bf16.msra.mxu0 %v1733_v22  ;;  %1656 = vmatprep.mubr.msk.f32.mxu0 %vm1812_vm0, %v1813_v1 }
 0x104   : > { %1735 = vmatprep.subr.bf16.mxu0 %v1811_v0 }
 0x105   : > { %v1793_v45 = vpop.eup %1792 }
 0x106   : > { %v568_v47 = vmul.f32 0.6931472, %v1793_v45 }
 0x107   : > { %1737 = vmatpush3.bf16.msra.mxu0 %v1736_v25  ;;  %v1555_v25 = vld [vmem:[%s2090_s9] ss:$0 sm:$0xff] }
 0x108   : > { %1738 = vmatprep.subr.bf16.mxu0 %v1811_v0 }
 0x10b   : > { %1740 = vmatpush3.bf16.msra.mxu0 %v1739_v28 }
 0x10c   : > { %1741 = vmatprep.subr.bf16.mxu0 %v1811_v0 }
 0x10f   : > { %1743 = vmatpush3.bf16.msra.mxu0 %v1742_v31 }
 0x110   : > { %1744 = vmatprep.subr.bf16.mxu0 %v1811_v0 }
 0x1d1   : > { %v720_v32 = vpop.f32.mrb[4].mxu0 }
 0x1d2   : > { %v1634_v33 = vpop.f32.mrb[5].mxu0 }
 0x1d5   : > { %v793_v34 = vpop.f32.mrb[6].mxu0 }
 0x1d6   : > { %v797_v35 = vmul.f32 %v793_v34, %v720_v32  ;;  %v1639_v36 = vpop.f32.mrb[7].mxu0 }
 0x1d8   : > { %1657 = vmatmul.mubr.msk.f32.vlgmr.msra.gmra.mrb[8].mxu0 %vm798_vm4, %v797_v35 }
 0x1d9   : > { %1663 = vmatprep.mubr.msk.f32.mxu0 %vm1812_vm0, %v1813_v1  ;;  %1746 = vmatpush3.bf16.msra.mxu0 %v1745_v42 }
 0x2ab   : > { %v868_v37 = vpop.f32.mrb[8].mxu0 }
 0x2ac   : > { %v1658_v38 = vpop.f32.mrb[9].mxu0  ;;  %v872_v39 = vand.u32 2147483647, %v868_v37 }
 0x2ae   : > { %v873_v40 = vsel %vm492_vm1, %v872_v39, 0.0 }
 0x2af   : > { %874 = vadd.xlane.f32.xlu0 %v873_v40 }
 0x2b3   : > { %486 = vadd.xlane.f32.xlu0 %v485_v41 }
 0x33c   : > { %v875_v44 = vpop.xlane.xlu0 %874 }
 0x33d   : > { %v876_v46 = vmax.f32 %v875_v44, 1e-12 }
 0x33f   : > { %1794 = vrcp.f32 %v876_v46 }
 0x340   : > { %v487_v48 = vpop.xlane.xlu0 %486 }
 0x341   : > { %vm569_vm6 = vcmp.gt.f32.partialorder %v487_v48, 0.0 }
 0x342   : > { %v572_v49 = vsel %vm569_vm6, %v568_v47, 0.0 }
 0x343   : > { %1667 = vmatpush3.msk.msra.mxu1 %vm650_vm2, %v572_v49 }
 0x344   : > { %1671 = vmatprep.subr.mxu1 %v1813_v1  ;;  %1669 = vmatmul.mubr.msk.f32.vlgmr.msra.gmra.mrb[0].mxu1 %vm646_vm3, %v1932_v16 }
 0x345   : > { %1672 = vmatpush3.msk.msra.mxu1 %vm650_vm2, %v572_v49  ;;  %1673 = vmatprep.mubr.msk.f32.mxu1 %vm1812_vm0, %v1813_v1 }
 0x346   : > { %1747 = vmatprep.subr.bf16.mxu1 %v1811_v0 }
 0x348   : > { %1674 = vmatmul.mubr.msk.f32.vlgmr.msra.gmra.mrb[2].mxu1 %vm646_vm3, %v458_v21 }
 0x349   : > { %v1795_v50 = vpop.eup %1794  ;;  %1708 = vmatprep.mubr.msk.f32.mxu1 %vm1812_vm0, %v1813_v1  ;;  %1749 = vmatpush3.bf16.msra.mxu1 %v1748_v55 }
 0x34a   : > { %v878_v51 = vmul.f32 %v1795_v50, %v868_v37  ;;  %1750 = vmatprep.subr.bf16.mxu1 %v1811_v0 }
 0x34c   : > { %1664 = vmatmul.mubr.msk.f32.vlgmr.msra.gmra.mrb[10].mxu0 %vm492_vm1, %v878_v51 }
 0x34d   : > { %1752 = vmatpush3.bf16.msra.mxu1 %v1751_v57 }
 0x34e   : > { %1753 = vmatprep.subr.bf16.mxu1 %v1811_v0 }
 0x351   : > { %1755 = vmatpush3.bf16.msra.mxu1 %v1754_v60 }
 0x352   : > { %1756 = vmatprep.subr.bf16.mxu1 %v1811_v0 }
 0x355   : > { %1758 = vmatpush3.bf16.msra.mxu1 %v1757_v63 }
 0x356   : > { %1759 = vmatprep.subr.bf16.mxu1 %v1811_v0 }
 0x359   : > { %1761 = vmatpush3.bf16.msra.mxu1 %v1760_v4 }
 0x35a   : > { %1762 = vmatprep.subr.bf16.mxu1 %v1811_v0 }
 0x35d   : > { %1764 = vmatpush3.bf16.msra.mxu1 %v1763_v7 }
 0x35e   : > { %1765 = vmatprep.subr.bf16.mxu1 %v1811_v0 }
 0x361   : > { %1767 = vmatpush3.bf16.msra.mxu1 %v1766_v10 }
 0x362   : > { %1768 = vmatprep.subr.bf16.mxu1 %v1811_v0 }
 0x365   : > { %1770 = vmatpush3.bf16.msra.mxu1 %v1769_v13 }
 0x417   : > { %v1021_v14 = vpop.f32.mrb[0].mxu1 }
 0x418   : > { %v1670_v15 = vpop.f32.mrb[1].mxu1 }
 0x41b   : > { %v1091_v16 = vpop.f32.mrb[2].mxu1 }
 0x41c   : > { %v1675_v17 = vpop.f32.mrb[3].mxu1 }
 0x41f   : > { %v948_v18 = vpop.f32.mrb[10].mxu0 }
 0x420   : > { %1103 = vrot.lane.b32.xlu0 %v948_v18, %s1814_s26  ;;  %1096 = vrot.lane.b32.xlu1 %v948_v18, %s1815_s27  ;;  %v1665_v0 = vpop.f32.mrb[11].mxu0 }
 0x424   : > { %1100 = vrot.lane.b32.xlu1 %v1091_v16, %s1816_s28 }
 0x492   : > { %v1097_v19 = vpop.permute.xlu1 %1096  ;;  %v1104_v22 = vpop.permute.xlu0 %1103 }
 0x493   : > { %v1107_v20 = vsel %vm1106_vm7, %v1021_v14, %v1097_v19 }
 0x496   : > { %v1101_v21 = vpop.permute.xlu1 %1100 }
 0x497   : > { %v1108_v23 = vsel %vm798_vm4, %v1107_v20, %v1101_v21 }
 0x498   : > { %v1110_v24 = vsel %vm1109_vm8, %v1108_v23, %v1104_v22 }
 0x499   : > { %1709 = vmatmul.mubr.f32.vlgmr.msra.gmra.mrb[4].mxu1 %v1110_v24 }
 0x56c   : > { %v1183_v26 = vpop.f32.mrb[4].mxu1 }
 0x56d   : > { %v1184_v27 = vadd.f32 %v1555_v25, %v1183_v26  ;;  %v1710_v28 = vpop.f32.mrb[5].mxu1 }
 0x56f   : > { %1796 = vtanh.f32 %v1184_v27 }
 0x573   : > { %1191 = sbr.rel (%p1556_p4) target bundleno = 1402 (0x57a), region = 68 }
 0x579   : > { %v1797_v29 = vpop.eup %1796 }
 0x57a PF: > { %1711 = vmatprep.subr.mxu0 %v1813_v1  ;;  %1713 = vmatprep.mubr.msk.f32.mxu0 %vm1812_vm0, %v1813_v1  ;;  %v1195_v31 = vld [vmem:[%s2087_s6] sm:$0x3]  ;;  %vm1196_vm10 = vcmask 64512   ;;  %s1558_s15 = sshll.u32 %s1891_s22, 2  ;;  %vm1275_vm11 = vcmask 523268   ;;  %vm1271_vm12 = vcmask 517120  }
 0x57b   : > { %1712 = vmatpush3.msra.mxu0 %v1797_v29  ;;  %s1274_s16 = scalar_lea.vmem [#allocation3], %s1558_s15  ;;  %v1194_v32 = vld [vmem:[#allocation2] sm:$0x3]  ;;  %p1559_p5 = scmp.ne.s32.totalorder %s1891_s22, 1 }
 0x57c   : > { %1714 = vmatmul.mubr.msk.f32.vlgmr.msra.gmra.mrb[12].mxu0 %vm1196_vm10, %v1195_v31  ;;  %1276 = vst.msk [vmem:[%s1274_s16 - $0x4] sm:$0xf0] %vm1275_vm11, %v1797_v29  ;;  %v1818_v36 = vmov (!%p1559_p5), 0.0   ;;  %vm1819_vm13 = vmmov (!%p1559_p5), 0   ;;  %v1283_v44 = vld [vmem:[%s2091_s10] sm:$0xff] (!%p1559_p5) }
 0x57d   : > { %1716 = vmatprep.subr.mxu0 (!%p1559_p5), %v1818_v36  ;;  %1721 = vmatprep.subr.mxu1 (!%p1559_p5), %v1818_v36  ;;  %v1457_v58 = vmul.f32 (!%p1559_p5), 0.9, %v1283_v44 }
 0x57e   : > { %1718 = vmatprep.mubr.msk.f32.mxu0 (!%p1559_p5), %vm1819_vm13, %v1818_v36  ;;  %1723 = vmatprep.mubr.msk.f32.mxu1 (!%p1559_p5), %vm1819_vm13, %v1818_v36 }
 0x583   : > { %v1798_v1 = vld [vmem:[#allocation3] sm:$0xff] (!%p1559_p5)  }
 0x584   : > { %1717 = vmatpush3.xpose.msk.msra.mxu0 (!%p1559_p5), %vm798_vm4, %v1798_v1  ;;  %1722 = vmatpush3.msra.mxu1 (!%p1559_p5), %v1798_v1 }
 0x64c   : > { %1280 = sbr.rel (%p1559_p5) target bundleno = 2384 (0x950), region = 72 }
 0x64f   : > { %v1266_v33 = vpop.f32.mrb[12].mxu0 }
 0x650   : > { %v1270_v34 = vadd.f32 %v1266_v33, %v1194_v32  ;;  %v1715_v35 = vpop.f32.mrb[13].mxu0 }
 0x652   : > { %1272 = vst.msk [vmem:[#allocation2] sm:$0x3] %vm1271_vm12, %v1270_v34 }
 0x659   : > { %v1281_v37 = vld [vmem:[#allocation2] sm:$0x3] }
 0x65a   : > { %1282 = vst.msk [vmem:[%s2092_s11] sm:$0x3] %vm1271_vm12, %v1281_v37  ;;  %v1286_v38 = vsel %vm1271_vm12, %v1281_v37, 0.0 }
 0x65b   : > { %v1287_v39 = vrot.slane %v1286_v38, 4 }
 0x65d   : > { %v1288_v40 = vadd.f32 %v1287_v39, %v1286_v38 }
 0x65f   : > { %v1289_v41 = vrot.slane %v1288_v40, 2 }
 0x661   : > { %v1290_v42 = vadd.f32 %v1289_v41, %v1288_v40 }
 0x663   : > { %v1291_v43 = vrot.slane %v1290_v42, 1 }
 0x665   : > { %v1292_v45 = vadd.f32 %v1291_v43, %v1290_v42 }
 0x667   : > { %v1293_v46 = vsub.f32 %v1283_v44, %v1292_v45 }
 0x669   : > { %1719 = vmatmul.mubr.msk.f32.vlgmr.msra.gmra.mrb[0].mxu0 %vm798_vm4, %v1293_v46 }
 0x73c   : > { %v1368_v47 = vpop.f32.mrb[0].mxu0 }
 0x73d   : > { %v1720_v48 = vpop.f32.mrb[1].mxu0  ;;  %v1372_v49 = vsel %vm1196_vm10, %v1368_v47, -inf }
 0x73e   : > { %1373 = vmax.xlane.f32.xlu0 %v1372_v49 }
 0x7cb   : > { %v1374_v50 = vpop.xlane.xlu0 %1373 }
 0x7cc   : > { %v1375_v51 = vsub.f32 %v1368_v47, %v1374_v50 }
 0x7ce   : > { %v1376_v52 = vmul.f32 1.442695, %v1375_v51 }
 0x7d0   : > { %1799 = vpow2.f32 %v1376_v52 }
 0x7da   : > { %v1800_v53 = vpop.eup %1799 }
 0x7db   : > { %v1378_v54 = vsel %vm1196_vm10, %v1800_v53, 0.0 }
 0x7dc   : > { %1379 = vadd.xlane.f32.xlu0 %v1378_v54 }
 0x869   : > { %v1380_v55 = vpop.xlane.xlu0 %1379 }
 0x86a   : > { %1801 = vrcp.f32 %v1380_v55 }
 0x874   : > { %v1802_v56 = vpop.eup %1801 }
 0x875   : > { %v1382_v57 = vmul.f32 %v1802_v56, %v1800_v53 }
 0x877   : > { %1724 = vmatmul.mubr.msk.f32.vlgmr.msra.gmra.mrb[0].mxu1 %vm1196_vm10, %v1382_v57 }
 0x94a   : > { %v1453_v59 = vpop.f32.mrb[0].mxu1 }
 0x94b   : > { %v1458_v60 = vmul.f32 0.1, %v1453_v59  ;;  %v1725_v61 = vpop.f32.mrb[1].mxu1 }
 0x94d   : > { %v1459_v62 = vadd.f32 %v1458_v60, %v1457_v58 }
 0x94f   : > { %1460 = vst.msk [vmem:[%s2093_s12] sm:$0xff] %vm798_vm4, %v1459_v62 }
 0x950 PF: > { %s23_s21 = sadd.s32 1, %s1809_s21  }
 0x951   : > { %p20_p6 = scmp.ge.s32.totalorder %s23_s21, 4  }
 0x953   :  { %22 = sbr.rel (!%p20_p6) target bundleno = 1 (0x1), region = 116 }

</bundles_post_ra>
